<compile_context>
chip_gen: v6e
topology: v6e:2x2x1
jax: 0.10.0
libtpu: 0.0.40
codegen_flags: <defaults>
</compile_context>

<pallas_src>
import functools
import math

import jax
import jax.numpy as jnp
import numpy as np
from jax.experimental import pallas as pl
from jax.experimental.pallas import tpu as pltpu

EPS = 1e-5          # nn.LayerNorm default eps
NEG_INF = -1e30     # finite "minus infinity" for key masking


def _round_up(x, m):
    return (x + m - 1) // m * m


def _layernorm(v, w, b):
    mu = jnp.mean(v, axis=-1, keepdims=True)
    var = jnp.mean((v - mu) ** 2, axis=-1, keepdims=True)
    return (v - mu) * jax.lax.rsqrt(var + EPS) * w + b


def _gelu_tanh(x):
    # tanh-form GELU: the transcendental goes to the EUP slot, VALU stays free.
    # |difference| vs. exact-erf GELU <= ~3e-3, well inside test tolerance.
    c = 0.7978845608028654  # sqrt(2/pi)
    return 0.5 * x * (1.0 + jnp.tanh(c * (x + 0.044715 * x * x * x)))


# --------------------------------------------------------------------------
# Kernel 1: patch-embed matmul (Conv2d k=s=patch  ==  patches @ W + b),
# with the patch-token positional embedding fused into the epilogue.
# Grid = (batch, patch-row tiles), both parallel.
# --------------------------------------------------------------------------
def _patch_embed_kernel(p_ref, w_ref, b_ref, pos_ref, o_ref):
    o_ref[0] = (
        jnp.dot(p_ref[0], w_ref[...], preferred_element_type=jnp.float32)
        + b_ref[...]
        + pos_ref[0]
    )


def patch_embed(patches_bf16, w_bf16, b, pos_patch, *, tile_n=128):
    """patches: (B, Np, K) bf16; w: (K, D) bf16; b: (1, D) f32; pos: (1, Np, D) f32."""
    B, Np, K = patches_bf16.shape
    D = w_bf16.shape[1]
    tn = min(tile_n, Np)
    Np_p = _round_up(Np, tn)
    if Np_p != Np:
        patches_bf16 = jnp.pad(patches_bf16, ((0, 0), (0, Np_p - Np), (0, 0)))
        pos_patch = jnp.pad(pos_patch, ((0, 0), (0, Np_p - Np), (0, 0)))
    out = pl.pallas_call(
        _patch_embed_kernel,
        grid=(B, Np_p // tn),
        in_specs=[
            pl.BlockSpec((1, tn, K), lambda b_, m: (b_, m, 0)),
            pl.BlockSpec((K, D), lambda b_, m: (0, 0)),
            pl.BlockSpec((1, D), lambda b_, m: (0, 0)),
            pl.BlockSpec((1, tn, D), lambda b_, m: (0, m, 0)),
        ],
        out_specs=pl.BlockSpec((1, tn, D), lambda b_, m: (b_, m, 0)),
        out_shape=jax.ShapeDtypeStruct((B, Np_p, D), jnp.float32),
        compiler_params=pltpu.CompilerParams(
            dimension_semantics=("parallel", "parallel")),
    )(patches_bf16, w_bf16, b, pos_patch)
    return out[:, :Np]


# --------------------------------------------------------------------------
# Kernel 2: one full transformer Block (LN1 -> MHSA -> +res -> LN2 -> MLP -> +res)
# One grid step per batch element ("parallel" -> uses both TCs on v7x for B>=2).
# Attention is batched over heads via leading-batch dot_generals; weights come
# in pre-split as (H, D, hd) / (H, hd, D), so no in-kernel transposes are needed.
# --------------------------------------------------------------------------
def _block_kernel(x_ref, ln1w_ref, ln1b_ref, wq_ref, wk_ref, wv_ref,
                  wproj_ref, bproj_ref, ln2w_ref, ln2b_ref,
                  wfc1_ref, bfc1_ref, wfc2_ref, bfc2_ref, o_ref,
                  *, num_heads, n_valid):
    x = x_ref[0]                              # (N, D) f32 residual stream
    N, D = x.shape
    hd = D // num_heads
    scale = hd ** (-0.5)
    bf16 = jnp.bfloat16

    # ---- LN1 + multi-head attention -------------------------------------
    xn = _layernorm(x, ln1w_ref[...], ln1b_ref[...]).astype(bf16)
    xb = jnp.broadcast_to(xn[None], (num_heads, N, D))            # (H, N, D) bf16

    q = jnp.einsum("hnd,hdk->hnk", xb, wq_ref[...],
                   preferred_element_type=jnp.float32)            # (H, N, hd) f32
    k = jnp.einsum("hnd,hdk->hnk", xb, wk_ref[...],
                   preferred_element_type=jnp.float32)
    v = jnp.einsum("hnd,hdk->hnk", xb, wv_ref[...],
                   preferred_element_type=jnp.float32)

    s = jnp.einsum("hnd,hmd->hnm", q.astype(bf16), k.astype(bf16),
                   preferred_element_type=jnp.float32) * scale    # (H, N, N) f32
    if n_valid < N:
        # mask padded key positions so they never contribute to real tokens
        key_idx = jax.lax.broadcasted_iota(jnp.int32, (1, N), 1)
        s = s + jnp.where(key_idx < n_valid, 0.0, NEG_INF)[None]

    s = s - jnp.max(s, axis=-1, keepdims=True)
    p = jnp.exp(s)
    p = p * pl.reciprocal(jnp.sum(p, axis=-1, keepdims=True), approx=True)

    o = jnp.einsum("hnm,hmd->hnd", p.astype(bf16), v.astype(bf16),
                   preferred_element_type=jnp.float32)            # (H, N, hd)
    y = jnp.einsum("hnd,hdk->hnk", o.astype(bf16), wproj_ref[...],
                   preferred_element_type=jnp.float32)            # (H, N, D)
    y = jnp.sum(y, axis=0) + bproj_ref[...]                       # (N, D) f32
    x = x + y                                                     # residual 1

    # ---- LN2 + MLP -------------------------------------------------------
    xn2 = _layernorm(x, ln2w_ref[...], ln2b_ref[...]).astype(bf16)
    h1 = (jnp.dot(xn2, wfc1_ref[...], preferred_element_type=jnp.float32)
          + bfc1_ref[...])
    h1 = _gelu_tanh(h1).astype(bf16)
    h2 = (jnp.dot(h1, wfc2_ref[...], preferred_element_type=jnp.float32)
          + bfc2_ref[...])
    o_ref[0] = x + h2                                             # residual 2


def transformer_block(x, blk, *, num_heads, n_valid):
    B, N, D = x.shape
    H = num_heads
    hd = D // H
    hid = blk["w_fc1_bf16"].shape[1]

    def fullspec(shape):
        return pl.BlockSpec(shape, lambda b, _r=len(shape): (0,) * _r)

    kernel = functools.partial(_block_kernel, num_heads=num_heads, n_valid=n_valid)
    return pl.pallas_call(
        kernel,
        grid=(B,),
        in_specs=[
            pl.BlockSpec((1, N, D), lambda b: (b, 0, 0)),
            fullspec((1, D)), fullspec((1, D)),                        # ln1
            fullspec((H, D, hd)), fullspec((H, D, hd)), fullspec((H, D, hd)),  # q/k/v
            fullspec((H, hd, D)), fullspec((1, D)),                    # proj
            fullspec((1, D)), fullspec((1, D)),                        # ln2
            fullspec((D, hid)), fullspec((1, hid)),                    # fc1
            fullspec((hid, D)), fullspec((1, D)),                      # fc2
        ],
        out_specs=pl.BlockSpec((1, N, D), lambda b: (b, 0, 0)),
        out_shape=jax.ShapeDtypeStruct((B, N, D), jnp.float32),
        compiler_params=pltpu.CompilerParams(dimension_semantics=("parallel",)),
    )(x, blk["ln1_w"], blk["ln1_b"], blk["wq_h"], blk["wk_h"], blk["wv_h"],
      blk["wproj_h"], blk["b_proj"], blk["ln2_w"], blk["ln2_b"],
      blk["w_fc1_bf16"], blk["b_fc1"], blk["w_fc2_bf16"], blk["b_fc2"])


# --------------------------------------------------------------------------
# Kernel 3: final LayerNorm on the cls tokens only (input is already the
# sliced (B, D) cls rows -> no full-sequence DMA).
# --------------------------------------------------------------------------
def _cls_norm_kernel(x_ref, w_ref, b_ref, o_ref):
    o_ref[...] = _layernorm(x_ref[...], w_ref[...], b_ref[...])


def cls_norm(x_cls, w, b):
    B, D = x_cls.shape
    return pl.pallas_call(
        _cls_norm_kernel,
        out_shape=jax.ShapeDtypeStruct((B, D), jnp.float32),
    )(x_cls, w, b)


# --------------------------------------------------------------------------
# Glue: patch extraction (equivalent to stride=patch Conv2d unfolding)
# --------------------------------------------------------------------------
def extract_patches(x, patch):
    B, C, H, W = x.shape
    nH, nW = H // patch, W // patch
    x = x.reshape(B, C, nH, patch, nW, patch)
    x = x.transpose(0, 2, 4, 1, 3, 5)                 # [B, nH, nW, C, p, p]
    return x.reshape(B, nH * nW, C * patch * patch)   # flatten order = (c, kh, kw)


# --------------------------------------------------------------------------
# Wrapper-side parameter preparation: bf16 casts + per-head weight layouts.
# --------------------------------------------------------------------------
def prepare_params(params, *, num_heads):
    D = params["pos_embed"].shape[-1]
    hd = D // num_heads
    kp = {"conv_w": params["conv_w"].astype(jnp.bfloat16), "blocks": []}
    for blk in params["blocks"]:
        wqkv = blk["w_qkv"].reshape(D, 3, num_heads, hd)    # (D, 3, H, hd)
        kp["blocks"].append({
            "ln1_w": blk["ln1_w"], "ln1_b": blk["ln1_b"],
            "wq_h": jnp.transpose(wqkv[:, 0], (1, 0, 2)).astype(jnp.bfloat16),
            "wk_h": jnp.transpose(wqkv[:, 1], (1, 0, 2)).astype(jnp.bfloat16),
            "wv_h": jnp.transpose(wqkv[:, 2], (1, 0, 2)).astype(jnp.bfloat16),
            "wproj_h": blk["w_proj"].reshape(num_heads, hd, D).astype(jnp.bfloat16),
            "b_proj": blk["b_proj"],
            "ln2_w": blk["ln2_w"], "ln2_b": blk["ln2_b"],
            "w_fc1_bf16": blk["w_fc1"].astype(jnp.bfloat16),
            "b_fc1": blk["b_fc1"],
            "w_fc2_bf16": blk["w_fc2"].astype(jnp.bfloat16),
            "b_fc2": blk["b_fc2"],
        })
    return kp


# --------------------------------------------------------------------------
# Full forward
# --------------------------------------------------------------------------
def vit_forward(x, params, *, patch, num_heads):
    kp = prepare_params(params, num_heads=num_heads)
    B = x.shape[0]
    D = params["pos_embed"].shape[-1]

    patches = extract_patches(x, patch).astype(jnp.bfloat16)      # [B, Np, K]
    Np = patches.shape[1]
    pos_patch = params["pos_embed"][:, 1:, :]
    emb = patch_embed(patches, kp["conv_w"], params["conv_b"], pos_patch)  # pos fused

    cls = jnp.broadcast_to(params["cls_token"] + params["pos_embed"][:, :1, :],
                           (B, 1, D))
    tokens = jnp.concatenate([cls, emb], axis=1)                  # pos_drop = identity

    n_valid = Np + 1
    n_pad = _round_up(n_valid, 8)                                 # sublane-align seq
    if n_pad != n_valid:
        tokens = jnp.pad(tokens, ((0, 0), (0, n_pad - n_valid), (0, 0)))

    for blk in kp["blocks"]:
        tokens = transformer_block(tokens, blk, num_heads=num_heads, n_valid=n_valid)

    return cls_norm(tokens[:, 0, :], params["norm_w"], params["norm_b"])


# --------------------------------------------------------------------------
# Pure-JAX reference (mirrors the PyTorch forward exactly, all f32, exact GELU)
# --------------------------------------------------------------------------
def reference_forward(x, params, *, patch, num_heads):
    def ln(v, w, b):
        mu = jnp.mean(v, axis=-1, keepdims=True)
        var = jnp.mean((v - mu) ** 2, axis=-1, keepdims=True)
        return (v - mu) / jnp.sqrt(var + EPS) * w + b

    B = x.shape[0]
    D = params["pos_embed"].shape[-1]
    patches = extract_patches(x, patch)
    emb = patches @ params["conv_w"] + params["conv_b"]
    cls = jnp.broadcast_to(params["cls_token"], (B, 1, D))
    t = jnp.concatenate([cls, emb], axis=1) + params["pos_embed"]
    for blk in params["blocks"]:
        xn = ln(t, blk["ln1_w"], blk["ln1_b"])
        qkv = xn @ blk["w_qkv"]
        N = t.shape[1]
        hd = D // num_heads
        qkv = qkv.reshape(B, N, 3, num_heads, hd).transpose(2, 0, 3, 1, 4)
        q, k, v = qkv[0], qkv[1], qkv[2]
        attn = (q @ k.transpose(0, 1, 3, 2)) * (hd ** -0.5)
        attn = jax.nn.softmax(attn, axis=-1)
        y = (attn @ v).transpose(0, 2, 1, 3).reshape(B, N, D)
        y = y @ blk["w_proj"] + blk["b_proj"]
        t = t + y
        xn2 = ln(t, blk["ln2_w"], blk["ln2_b"])
        h = xn2 @ blk["w_fc1"] + blk["b_fc1"]
        h = jax.nn.gelu(h, approximate=False)
        h = h @ blk["w_fc2"] + blk["b_fc2"]
        t = t + h
    t = ln(t, params["norm_w"], params["norm_b"])
    return t[:, 0]


# --------------------------------------------------------------------------
# Deterministic parameter init (shapes from VisionTransformer.__init__)
# --------------------------------------------------------------------------
def init_params(key, *, in_chans, patch, embed_dim, depth, mlp_ratio, num_patches):
    K = in_chans * patch * patch
    hid = int(embed_dim * mlp_ratio)

    def tn(k, shape, std=0.02):
        return std * jax.random.truncated_normal(k, -2.0, 2.0, shape, jnp.float32)

    keys = jax.random.split(key, 4 + 4 * depth)
    ki = iter(keys)
    params = {
        # Conv2d(in_chans, D, k=p, s=p) reshaped to [K, D] matmul weight + bias
        "conv_w": tn(next(ki), (K, embed_dim), std=1.0 / math.sqrt(K)),
        "conv_b": jnp.zeros((1, embed_dim), jnp.float32),
        "cls_token": tn(next(ki), (1, 1, embed_dim)),
        "pos_embed": tn(next(ki), (1, num_patches + 1, embed_dim)),
        "norm_w": jnp.ones((1, embed_dim), jnp.float32),
        "norm_b": jnp.zeros((1, embed_dim), jnp.float32),
        "blocks": [],
    }
    _ = next(ki)  # spare
    for _d in range(depth):
        params["blocks"].append({
            "ln1_w": jnp.ones((1, embed_dim), jnp.float32),
            "ln1_b": jnp.zeros((1, embed_dim), jnp.float32),
            "w_qkv": tn(next(ki), (embed_dim, 3 * embed_dim)),   # qkv_bias=False
            "w_proj": tn(next(ki), (embed_dim, embed_dim)),
            "b_proj": jnp.zeros((1, embed_dim), jnp.float32),
            "ln2_w": jnp.ones((1, embed_dim), jnp.float32),
            "ln2_b": jnp.zeros((1, embed_dim), jnp.float32),
            "w_fc1": tn(next(ki), (embed_dim, hid)),
            "b_fc1": jnp.zeros((1, hid), jnp.float32),
            "w_fc2": tn(next(ki), (hid, embed_dim)),
            "b_fc2": jnp.zeros((1, embed_dim), jnp.float32),
        })
    return params


if __name__ == "__main__":
    # Small ViT config: img=16, patch=4 -> 16 patches, seq=17 (padded to 24),
    # D=32, 2 blocks, 4 heads.
    B, C, H, W = 2, 3, 16, 16
    patch = 4
    embed_dim = 32
    depth = 2
    num_heads = 4
    mlp_ratio = 4.0
    num_patches = (H // patch) * (W // patch)

    root = jax.random.PRNGKey(0)
    kx, kp = jax.random.split(root)
    x = jax.random.normal(kx, (B, C, H, W), jnp.float32)
    params = init_params(kp, in_chans=C, patch=patch, embed_dim=embed_dim,
                         depth=depth, mlp_ratio=mlp_ratio, num_patches=num_patches)

    fwd = jax.jit(functools.partial(vit_forward, patch=patch, num_heads=num_heads))
    out = jax.block_until_ready(fwd(x, params))
    assert out.shape == (B, embed_dim), out.shape

    ref = reference_forward(x, params, patch=patch, num_heads=num_heads)
    # bf16 MXU operands + tanh-GELU + approx reciprocal -> ~1e-2-level deviation
    np.testing.assert_allclose(np.asarray(out), np.asarray(ref),
                               rtol=2e-2, atol=2e-2)

    print("KERNEL_OK")
</pallas_src>

<mosaic_0001>
module attributes {stable_mosaic.version = 11 : i64} {
  func.func @_patch_embed_kernel(%arg0: i32, %arg1: i32, %arg2: memref<1x16x48xbf16, #tpu.memory_space<vmem>>, %arg3: memref<48x32xbf16, #tpu.memory_space<vmem>>, %arg4: memref<1x32xf32, #tpu.memory_space<vmem>>, %arg5: memref<1x16x32xf32, #tpu.memory_space<vmem>>, %arg6: memref<1x16x32xf32, #tpu.memory_space<vmem>>) attributes {dimension_semantics = [#tpu.dimension_semantics<parallel>, #tpu.dimension_semantics<parallel>], iteration_bounds = array<i64: 2, 1>, scalar_prefetch = 0 : i64, scratch_operands = 0 : i64, tpu.core_type = #tpu.core_type<tc>, window_params = [{transform_indices = @transform_0, window_bounds = array<i64: 1, 16, 48>}, {pipeline_mode = #tpu.pipeline_mode<synchronous>, transform_indices = @transform_1, window_bounds = array<i64: 48, 32>}, {pipeline_mode = #tpu.pipeline_mode<synchronous>, transform_indices = @transform_2, window_bounds = array<i64: 1, 32>}, {transform_indices = @transform_3, window_bounds = array<i64: 1, 16, 32>}, {transform_indices = @transform_4, window_bounds = array<i64: 1, 16, 32>}]} {
    %c0 = arith.constant 0 : index
    %c0_0 = arith.constant 0 : index
    %c0_1 = arith.constant 0 : index
    %0 = vector.load %arg2[%c0, %c0_0, %c0_1] : memref<1x16x48xbf16, #tpu.memory_space<vmem>>, vector<1x16x48xbf16>
    %1 = vector.shape_cast %0 : vector<1x16x48xbf16> to vector<16x48xbf16>
    %c0_2 = arith.constant 0 : index
    %c0_3 = arith.constant 0 : index
    %2 = vector.load %arg3[%c0_2, %c0_3] : memref<48x32xbf16, #tpu.memory_space<vmem>>, vector<48x32xbf16>
    %cst = arith.constant dense<0.000000e+00> : vector<16x32xf32>
    %3 = tpu.matmul %1, %2, %cst {dimension_numbers = #tpu.dot_dimension_numbers<[1], [0], [0], [1], [0, 0, 1, 1], [], []>} : vector<16x48xbf16>, vector<48x32xbf16>, vector<16x32xf32> -> vector<16x32xf32>
    %c0_4 = arith.constant 0 : index
    %c0_5 = arith.constant 0 : index
    %4 = vector.load %arg4[%c0_4, %c0_5] : memref<1x32xf32, #tpu.memory_space<vmem>>, vector<1x32xf32>
    %5 = vector.broadcast %4 : vector<1x32xf32> to vector<16x32xf32>
    %6 = arith.addf %3, %5 : vector<16x32xf32>
    %c0_6 = arith.constant 0 : index
    %c0_7 = arith.constant 0 : index
    %c0_8 = arith.constant 0 : index
    %7 = vector.load %arg5[%c0_6, %c0_7, %c0_8] : memref<1x16x32xf32, #tpu.memory_space<vmem>>, vector<1x16x32xf32>
    %8 = vector.shape_cast %7 : vector<1x16x32xf32> to vector<16x32xf32>
    %9 = arith.addf %6, %8 : vector<16x32xf32>
    %c0_9 = arith.constant 0 : index
    %c0_10 = arith.constant 0 : index
    %c0_11 = arith.constant 0 : index
    %10 = vector.load %arg6[%c0_9, %c0_10, %c0_11] : memref<1x16x32xf32, #tpu.memory_space<vmem>>, vector<1x16x32xf32>
    %11 = vector.shape_cast %10 : vector<1x16x32xf32> to vector<16x32xf32>
    %12 = vector.shape_cast %9 : vector<16x32xf32> to vector<1x16x32xf32>
    tpu.vector_store %arg6[%c0_9, %c0_10, %c0_11], %12 {strides = array<i32>} : memref<1x16x32xf32, #tpu.memory_space<vmem>>, vector<1x16x32xf32>,
    return
  }
  func.func @transform_0(%arg0: i32, %arg1: i32) -> (i32, i32, i32) {
    %c0_i32 = arith.constant 0 : i32
    %c0_i32_0 = arith.constant 0 : i32
    return %arg0, %arg1, %c0_i32 : i32, i32, i32
  }
  func.func @transform_1(%arg0: i32, %arg1: i32) -> (i32, i32) {
    %c0_i32 = arith.constant 0 : i32
    %c0_i32_0 = arith.constant 0 : i32
    %c0_i32_1 = arith.constant 0 : i32
    return %c0_i32, %c0_i32_0 : i32, i32
  }
  func.func @transform_2(%arg0: i32, %arg1: i32) -> (i32, i32) {
    %c0_i32 = arith.constant 0 : i32
    %c0_i32_0 = arith.constant 0 : i32
    %c0_i32_1 = arith.constant 0 : i32
    return %c0_i32, %c0_i32_0 : i32, i32
  }
  func.func @transform_3(%arg0: i32, %arg1: i32) -> (i32, i32, i32) {
    %c0_i32 = arith.constant 0 : i32
    %c0_i32_0 = arith.constant 0 : i32
    %c0_i32_1 = arith.constant 0 : i32
    return %c0_i32, %arg1, %c0_i32_0 : i32, i32, i32
  }
  func.func @transform_4(%arg0: i32, %arg1: i32) -> (i32, i32, i32) {
    %c0_i32 = arith.constant 0 : i32
    %c0_i32_0 = arith.constant 0 : i32
    return %arg0, %arg1, %c0_i32 : i32, i32, i32
  }
}

module attributes {stable_mosaic.version = 11 : i64} {
  func.func @_block_kernel(%arg0: i32, %arg1: memref<1x24x32xf32, #tpu.memory_space<vmem>>, %arg2: memref<1x32xf32, #tpu.memory_space<vmem>>, %arg3: memref<1x32xf32, #tpu.memory_space<vmem>>, %arg4: memref<4x32x8xbf16, #tpu.memory_space<vmem>>, %arg5: memref<4x32x8xbf16, #tpu.memory_space<vmem>>, %arg6: memref<4x32x8xbf16, #tpu.memory_space<vmem>>, %arg7: memref<4x8x32xbf16, #tpu.memory_space<vmem>>, %arg8: memref<1x32xf32, #tpu.memory_space<vmem>>, %arg9: memref<1x32xf32, #tpu.memory_space<vmem>>, %arg10: memref<1x32xf32, #tpu.memory_space<vmem>>, %arg11: memref<32x128xbf16, #tpu.memory_space<vmem>>, %arg12: memref<1x128xf32, #tpu.memory_space<vmem>>, %arg13: memref<128x32xbf16, #tpu.memory_space<vmem>>, %arg14: memref<1x32xf32, #tpu.memory_space<vmem>>, %arg15: memref<1x24x32xf32, #tpu.memory_space<vmem>>) attributes {dimension_semantics = [#tpu.dimension_semantics<parallel>], iteration_bounds = array<i64: 2>, scalar_prefetch = 0 : i64, scratch_operands = 0 : i64, tpu.core_type = #tpu.core_type<tc>, window_params = [{transform_indices = @transform_0, window_bounds = array<i64: 1, 24, 32>}, {pipeline_mode = #tpu.pipeline_mode<synchronous>, transform_indices = @transform_1, window_bounds = array<i64: 1, 32>}, {pipeline_mode = #tpu.pipeline_mode<synchronous>, transform_indices = @transform_2, window_bounds = array<i64: 1, 32>}, {pipeline_mode = #tpu.pipeline_mode<synchronous>, transform_indices = @transform_3, window_bounds = array<i64: 4, 32, 8>}, {pipeline_mode = #tpu.pipeline_mode<synchronous>, transform_indices = @transform_4, window_bounds = array<i64: 4, 32, 8>}, {pipeline_mode = #tpu.pipeline_mode<synchronous>, transform_indices = @transform_5, window_bounds = array<i64: 4, 32, 8>}, {pipeline_mode = #tpu.pipeline_mode<synchronous>, transform_indices = @transform_6, window_bounds = array<i64: 4, 8, 32>}, {pipeline_mode = #tpu.pipeline_mode<synchronous>, transform_indices = @transform_7, window_bounds = array<i64: 1, 32>}, {pipeline_mode = #tpu.pipeline_mode<synchronous>, transform_indices = @transform_8, window_bounds = array<i64: 1, 32>}, {pipeline_mode = #tpu.pipeline_mode<synchronous>, transform_indices = @transform_9, window_bounds = array<i64: 1, 32>}, {pipeline_mode = #tpu.pipeline_mode<synchronous>, transform_indices = @transform_10, window_bounds = array<i64: 32, 128>}, {pipeline_mode = #tpu.pipeline_mode<synchronous>, transform_indices = @transform_11, window_bounds = array<i64: 1, 128>}, {pipeline_mode = #tpu.pipeline_mode<synchronous>, transform_indices = @transform_12, window_bounds = array<i64: 128, 32>}, {pipeline_mode = #tpu.pipeline_mode<synchronous>, transform_indices = @transform_13, window_bounds = array<i64: 1, 32>}, {transform_indices = @transform_14, window_bounds = array<i64: 1, 24, 32>}]} {
    %c0 = arith.constant 0 : index
    %c0_0 = arith.constant 0 : index
    %c0_1 = arith.constant 0 : index
    %0 = vector.load %arg1[%c0, %c0_0, %c0_1] : memref<1x24x32xf32, #tpu.memory_space<vmem>>, vector<1x24x32xf32>
    %1 = vector.shape_cast %0 : vector<1x24x32xf32> to vector<24x32xf32>
    %c0_2 = arith.constant 0 : index
    %c0_3 = arith.constant 0 : index
    %2 = vector.load %arg2[%c0_2, %c0_3] : memref<1x32xf32, #tpu.memory_space<vmem>>, vector<1x32xf32>
    %c0_4 = arith.constant 0 : index
    %c0_5 = arith.constant 0 : index
    %3 = vector.load %arg3[%c0_4, %c0_5] : memref<1x32xf32, #tpu.memory_space<vmem>>, vector<1x32xf32>
    %cst = arith.constant dense<0.000000e+00> : vector<24xf32>
    %4 = vector.multi_reduction <add>, %1, %cst [1] : vector<24x32xf32> to vector<24xf32>
    %5 = vector.shape_cast %4 : vector<24xf32> to vector<24x1xf32>
    %cst_6 = arith.constant 3.200000e+01 : f32
    %6 = vector.broadcast %cst_6 : f32 to vector<24x1xf32>
    %7 = arith.divf %5, %6 : vector<24x1xf32>
    %8 = vector.broadcast %7 : vector<24x1xf32> to vector<24x32xf32>
    %9 = arith.subf %1, %8 : vector<24x32xf32>
    %10 = arith.mulf %9, %9 : vector<24x32xf32>
    %cst_7 = arith.constant dense<0.000000e+00> : vector<24xf32>
    %11 = vector.multi_reduction <add>, %10, %cst_7 [1] : vector<24x32xf32> to vector<24xf32>
    %12 = vector.shape_cast %11 : vector<24xf32> to vector<24x1xf32>
    %cst_8 = arith.constant 3.200000e+01 : f32
    %13 = vector.broadcast %cst_8 : f32 to vector<24x1xf32>
    %14 = arith.divf %12, %13 : vector<24x1xf32>
    %15 = vector.broadcast %7 : vector<24x1xf32> to vector<24x32xf32>
    %16 = arith.subf %1, %15 : vector<24x32xf32>
    %cst_9 = arith.constant 9.99999974E-6 : f32
    %17 = vector.broadcast %cst_9 : f32 to vector<24x1xf32>
    %18 = arith.addf %14, %17 : vector<24x1xf32>
    %19 = math.rsqrt %18 : vector<24x1xf32>
    %20 = vector.broadcast %19 : vector<24x1xf32> to vector<24x32xf32>
    %21 = arith.mulf %16, %20 : vector<24x32xf32>
    %22 = vector.broadcast %2 : vector<1x32xf32> to vector<24x32xf32>
    %23 = arith.mulf %21, %22 : vector<24x32xf32>
    %24 = vector.broadcast %3 : vector<1x32xf32> to vector<24x32xf32>
    %25 = arith.addf %23, %24 : vector<24x32xf32>
    %26 = arith.truncf %25 : vector<24x32xf32> to vector<24x32xbf16>
    %27 = vector.shape_cast %26 : vector<24x32xbf16> to vector<1x24x32xbf16>
    %28 = vector.shape_cast %27 : vector<1x24x32xbf16> to vector<1x24x32xbf16>
    %29 = vector.broadcast %28 : vector<1x24x32xbf16> to vector<4x24x32xbf16>
    %c0_10 = arith.constant 0 : index
    %c0_11 = arith.constant 0 : index
    %c0_12 = arith.constant 0 : index
    %30 = vector.load %arg4[%c0_10, %c0_11, %c0_12] : memref<4x32x8xbf16, #tpu.memory_space<vmem>>, vector<4x32x8xbf16>
    "tpu.trace_start"() <{level = 10 : i32, message = "hnd,hdk->hnk"}> : () -> ()
    %cst_13 = arith.constant dense<0.000000e+00> : vector<4x24x8xf32>
    %31 = tpu.matmul %29, %30, %cst_13 {dimension_numbers = #tpu.dot_dimension_numbers<[2], [1], [1], [2], [0, 0, 0, 1, 1, 2], [0], [0]>} : vector<4x24x32xbf16>, vector<4x32x8xbf16>, vector<4x24x8xf32> -> vector<4x24x8xf32>
    "tpu.trace_stop"() : () -> ()
    %c0_14 = arith.constant 0 : index
    %c0_15 = arith.constant 0 : index
    %c0_16 = arith.constant 0 : index
    %32 = vector.load %arg5[%c0_14, %c0_15, %c0_16] : memref<4x32x8xbf16, #tpu.memory_space<vmem>>, vector<4x32x8xbf16>
    "tpu.trace_start"() <{level = 10 : i32, message = "hnd,hdk->hnk"}> : () -> ()
    %cst_17 = arith.constant dense<0.000000e+00> : vector<4x24x8xf32>
    %33 = tpu.matmul %29, %32, %cst_17 {dimension_numbers = #tpu.dot_dimension_numbers<[2], [1], [1], [2], [0, 0, 0, 1, 1, 2], [0], [0]>} : vector<4x24x32xbf16>, vector<4x32x8xbf16>, vector<4x24x8xf32> -> vector<4x24x8xf32>
    "tpu.trace_stop"() : () -> ()
    %c0_18 = arith.constant 0 : index
    %c0_19 = arith.constant 0 : index
    %c0_20 = arith.constant 0 : index
    %34 = vector.load %arg6[%c0_18, %c0_19, %c0_20] : memref<4x32x8xbf16, #tpu.memory_space<vmem>>, vector<4x32x8xbf16>
    "tpu.trace_start"() <{level = 10 : i32, message = "hnd,hdk->hnk"}> : () -> ()
    %cst_21 = arith.constant dense<0.000000e+00> : vector<4x24x8xf32>
    %35 = tpu.matmul %29, %34, %cst_21 {dimension_numbers = #tpu.dot_dimension_numbers<[2], [1], [1], [2], [0, 0, 0, 1, 1, 2], [0], [0]>} : vector<4x24x32xbf16>, vector<4x32x8xbf16>, vector<4x24x8xf32> -> vector<4x24x8xf32>
    "tpu.trace_stop"() : () -> ()
    %36 = arith.truncf %31 : vector<4x24x8xf32> to vector<4x24x8xbf16>
    %37 = arith.truncf %33 : vector<4x24x8xf32> to vector<4x24x8xbf16>
    "tpu.trace_start"() <{level = 10 : i32, message = "hnd,hmd->hnm"}> : () -> ()
    %cst_22 = arith.constant dense<0.000000e+00> : vector<4x24x24xf32>
    %38 = tpu.matmul %36, %37, %cst_22 {dimension_numbers = #tpu.dot_dimension_numbers<[2], [2], [1], [1], [0, 0, 0, 1, 1, 1], [0], [0]>} : vector<4x24x8xbf16>, vector<4x24x8xbf16>, vector<4x24x24xf32> -> vector<4x24x24xf32>
    "tpu.trace_stop"() : () -> ()
    %cst_23 = arith.constant 0.353553385 : f32
    %39 = vector.broadcast %cst_23 : f32 to vector<4x24x24xf32>
    %40 = arith.mulf %38, %39 : vector<4x24x24xf32>
    %41 = tpu.iota {dimensions = array<i32: 1>} : vector<1x24xi32>
    %c17_i32 = arith.constant 17 : i32
    %42 = vector.broadcast %c17_i32 : i32 to vector<1x24xi32>
    %43 = arith.cmpi slt, %41, %42 : vector<1x24xi32>
    %cst_24 = arith.constant 0.000000e+00 : f32
    %cst_25 = arith.constant -1.000000e+30 : f32
    %44 = vector.broadcast %cst_24 : f32 to vector<1x24xf32>
    %45 = vector.broadcast %cst_25 : f32 to vector<1x24xf32>
    %46 = arith.select %43, %44, %45 : vector<1x24xi1>, vector<1x24xf32>
    %47 = vector.shape_cast %46 : vector<1x24xf32> to vector<1x1x24xf32>
    %48 = vector.broadcast %47 : vector<1x1x24xf32> to vector<4x24x24xf32>
    %49 = arith.addf %40, %48 : vector<4x24x24xf32>
    %cst_26 = arith.constant dense<0xFF800000> : vector<4x24xf32>
    %50 = vector.multi_reduction <maximumf>, %49, %cst_26 [2] : vector<4x24x24xf32> to vector<4x24xf32>
    %51 = vector.shape_cast %50 : vector<4x24xf32> to vector<4x24x1xf32>
    %52 = vector.broadcast %51 : vector<4x24x1xf32> to vector<4x24x24xf32>
    %53 = arith.subf %49, %52 : vector<4x24x24xf32>
    %54 = math.exp %53 : vector<4x24x24xf32>
    %cst_27 = arith.constant dense<0.000000e+00> : vector<4x24xf32>
    %55 = vector.multi_reduction <add>, %54, %cst_27 [2] : vector<4x24x24xf32> to vector<4x24xf32>
    %56 = vector.shape_cast %55 : vector<4x24xf32> to vector<4x24x1xf32>
    %57 = tpu.reciprocal %56 {approx = true} : vector<4x24x1xf32> -> vector<4x24x1xf32>
    %58 = vector.broadcast %57 : vector<4x24x1xf32> to vector<4x24x24xf32>
    %59 = arith.mulf %54, %58 : vector<4x24x24xf32>
    %60 = arith.truncf %59 : vector<4x24x24xf32> to vector<4x24x24xbf16>
    %61 = arith.truncf %35 : vector<4x24x8xf32> to vector<4x24x8xbf16>
    "tpu.trace_start"() <{level = 10 : i32, message = "hnm,hmd->hnd"}> : () -> ()
    %cst_28 = arith.constant dense<0.000000e+00> : vector<4x24x8xf32>
    %62 = tpu.matmul %60, %61, %cst_28 {dimension_numbers = #tpu.dot_dimension_numbers<[2], [1], [1], [2], [0, 0, 0, 1, 1, 2], [0], [0]>} : vector<4x24x24xbf16>, vector<4x24x8xbf16>, vector<4x24x8xf32> -> vector<4x24x8xf32>
    "tpu.trace_stop"() : () -> ()
    %63 = arith.truncf %62 : vector<4x24x8xf32> to vector<4x24x8xbf16>
    %c0_29 = arith.constant 0 : index
    %c0_30 = arith.constant 0 : index
    %c0_31 = arith.constant 0 : index
    %64 = vector.load %arg7[%c0_29, %c0_30, %c0_31] : memref<4x8x32xbf16, #tpu.memory_space<vmem>>, vector<4x8x32xbf16>
    "tpu.trace_start"() <{level = 10 : i32, message = "hnd,hdk->hnk"}> : () -> ()
    %cst_32 = arith.constant dense<0.000000e+00> : vector<4x24x32xf32>
    %65 = tpu.matmul %63, %64, %cst_32 {dimension_numbers = #tpu.dot_dimension_numbers<[2], [1], [1], [2], [0, 0, 0, 1, 1, 2], [0], [0]>} : vector<4x24x8xbf16>, vector<4x8x32xbf16>, vector<4x24x32xf32> -> vector<4x24x32xf32>
    "tpu.trace_stop"() : () -> ()
    %cst_33 = arith.constant dense<0.000000e+00> : vector<24x32xf32>
    %66 = vector.multi_reduction <add>, %65, %cst_33 [0] : vector<4x24x32xf32> to vector<24x32xf32>
    %c0_34 = arith.constant 0 : index
    %c0_35 = arith.constant 0 : index
    %67 = vector.load %arg8[%c0_34, %c0_35] : memref<1x32xf32, #tpu.memory_space<vmem>>, vector<1x32xf32>
    %68 = vector.broadcast %67 : vector<1x32xf32> to vector<24x32xf32>
    %69 = arith.addf %66, %68 : vector<24x32xf32>
    %70 = arith.addf %1, %69 : vector<24x32xf32>
    %c0_36 = arith.constant 0 : index
    %c0_37 = arith.constant 0 : index
    %71 = vector.load %arg9[%c0_36, %c0_37] : memref<1x32xf32, #tpu.memory_space<vmem>>, vector<1x32xf32>
    %c0_38 = arith.constant 0 : index
    %c0_39 = arith.constant 0 : index
    %72 = vector.load %arg10[%c0_38, %c0_39] : memref<1x32xf32, #tpu.memory_space<vmem>>, vector<1x32xf32>
    %cst_40 = arith.constant dense<0.000000e+00> : vector<24xf32>
    %73 = vector.multi_reduction <add>, %70, %cst_40 [1] : vector<24x32xf32> to vector<24xf32>
    %74 = vector.shape_cast %73 : vector<24xf32> to vector<24x1xf32>
    %cst_41 = arith.constant 3.200000e+01 : f32
    %75 = vector.broadcast %cst_41 : f32 to vector<24x1xf32>
    %76 = arith.divf %74, %75 : vector<24x1xf32>
    %77 = vector.broadcast %76 : vector<24x1xf32> to vector<24x32xf32>
    %78 = arith.subf %70, %77 : vector<24x32xf32>
    %79 = arith.mulf %78, %78 : vector<24x32xf32>
    %cst_42 = arith.constant dense<0.000000e+00> : vector<24xf32>
    %80 = vector.multi_reduction <add>, %79, %cst_42 [1] : vector<24x32xf32> to vector<24xf32>
    %81 = vector.shape_cast %80 : vector<24xf32> to vector<24x1xf32>
    %cst_43 = arith.constant 3.200000e+01 : f32
    %82 = vector.broadcast %cst_43 : f32 to vector<24x1xf32>
    %83 = arith.divf %81, %82 : vector<24x1xf32>
    %84 = vector.broadcast %76 : vector<24x1xf32> to vector<24x32xf32>
    %85 = arith.subf %70, %84 : vector<24x32xf32>
    %cst_44 = arith.constant 9.99999974E-6 : f32
    %86 = vector.broadcast %cst_44 : f32 to vector<24x1xf32>
    %87 = arith.addf %83, %86 : vector<24x1xf32>
    %88 = math.rsqrt %87 : vector<24x1xf32>
    %89 = vector.broadcast %88 : vector<24x1xf32> to vector<24x32xf32>
    %90 = arith.mulf %85, %89 : vector<24x32xf32>
    %91 = vector.broadcast %71 : vector<1x32xf32> to vector<24x32xf32>
    %92 = arith.mulf %90, %91 : vector<24x32xf32>
    %93 = vector.broadcast %72 : vector<1x32xf32> to vector<24x32xf32>
    %94 = arith.addf %92, %93 : vector<24x32xf32>
    %95 = arith.truncf %94 : vector<24x32xf32> to vector<24x32xbf16>
    %c0_45 = arith.constant 0 : index
    %c0_46 = arith.constant 0 : index
    %96 = vector.load %arg11[%c0_45, %c0_46] : memref<32x128xbf16, #tpu.memory_space<vmem>>, vector<32x128xbf16>
    %cst_47 = arith.constant dense<0.000000e+00> : vector<24x128xf32>
    %97 = tpu.matmul %95, %96, %cst_47 {dimension_numbers = #tpu.dot_dimension_numbers<[1], [0], [0], [1], [0, 0, 1, 1], [], []>} : vector<24x32xbf16>, vector<32x128xbf16>, vector<24x128xf32> -> vector<24x128xf32>
    %c0_48 = arith.constant 0 : index
    %c0_49 = arith.constant 0 : index
    %98 = vector.load %arg12[%c0_48, %c0_49] : memref<1x128xf32, #tpu.memory_space<vmem>>, vector<1x128xf32>
    %99 = vector.broadcast %98 : vector<1x128xf32> to vector<24x128xf32>
    %100 = arith.addf %97, %99 : vector<24x128xf32>
    %cst_50 = arith.constant 5.000000e-01 : f32
    %101 = vector.broadcast %cst_50 : f32 to vector<24x128xf32>
    %102 = arith.mulf %101, %100 : vector<24x128xf32>
    %cst_51 = arith.constant 4.471500e-02 : f32
    %103 = vector.broadcast %cst_51 : f32 to vector<24x128xf32>
    %104 = arith.mulf %103, %100 : vector<24x128xf32>
    %105 = arith.mulf %104, %100 : vector<24x128xf32>
    %106 = arith.mulf %105, %100 : vector<24x128xf32>
    %107 = arith.addf %100, %106 : vector<24x128xf32>
    %cst_52 = arith.constant 0.797884583 : f32
    %108 = vector.broadcast %cst_52 : f32 to vector<24x128xf32>
    %109 = arith.mulf %108, %107 : vector<24x128xf32>
    %110 = math.tanh %109 : vector<24x128xf32>
    %cst_53 = arith.constant 1.000000e+00 : f32
    %111 = vector.broadcast %cst_53 : f32 to vector<24x128xf32>
    %112 = arith.addf %111, %110 : vector<24x128xf32>
    %113 = arith.mulf %102, %112 : vector<24x128xf32>
    %114 = arith.truncf %113 : vector<24x128xf32> to vector<24x128xbf16>
    %c0_54 = arith.constant 0 : index
    %c0_55 = arith.constant 0 : index
    %115 = vector.load %arg13[%c0_54, %c0_55] : memref<128x32xbf16, #tpu.memory_space<vmem>>, vector<128x32xbf16>
    %cst_56 = arith.constant dense<0.000000e+00> : vector<24x32xf32>
    %116 = tpu.matmul %114, %115, %cst_56 {dimension_numbers = #tpu.dot_dimension_numbers<[1], [0], [0], [1], [0, 0, 1, 1], [], []>} : vector<24x128xbf16>, vector<128x32xbf16>, vector<24x32xf32> -> vector<24x32xf32>
    %c0_57 = arith.constant 0 : index
    %c0_58 = arith.constant 0 : index
    %117 = vector.load %arg14[%c0_57, %c0_58] : memref<1x32xf32, #tpu.memory_space<vmem>>, vector<1x32xf32>
    %118 = vector.broadcast %117 : vector<1x32xf32> to vector<24x32xf32>
    %119 = arith.addf %116, %118 : vector<24x32xf32>
    %120 = arith.addf %70, %119 : vector<24x32xf32>
    %c0_59 = arith.constant 0 : index
    %c0_60 = arith.constant 0 : index
    %c0_61 = arith.constant 0 : index
    %121 = vector.load %arg15[%c0_59, %c0_60, %c0_61] : memref<1x24x32xf32, #tpu.memory_space<vmem>>, vector<1x24x32xf32>
    %122 = vector.shape_cast %121 : vector<1x24x32xf32> to vector<24x32xf32>
    %123 = vector.shape_cast %120 : vector<24x32xf32> to vector<1x24x32xf32>
    tpu.vector_store %arg15[%c0_59, %c0_60, %c0_61], %123 {strides = array<i32>} : memref<1x24x32xf32, #tpu.memory_space<vmem>>, vector<1x24x32xf32>,
    return
  }
  func.func @transform_0(%arg0: i32) -> (i32, i32, i32) {
    %c0_i32 = arith.constant 0 : i32
    %c0_i32_0 = arith.constant 0 : i32
    %c0_i32_1 = arith.constant 0 : i32
    return %arg0, %c0_i32, %c0_i32_0 : i32, i32, i32
  }
  func.func @transform_1(%arg0: i32) -> (i32, i32) {
    %c0_i32 = arith.constant 0 : i32
    %c0_i32_0 = arith.constant 0 : i32
    %c0_i32_1 = arith.constant 0 : i32
    return %c0_i32, %c0_i32_0 : i32, i32
  }
  func.func @transform_2(%arg0: i32) -> (i32, i32) {
    %c0_i32 = arith.constant 0 : i32
    %c0_i32_0 = arith.constant 0 : i32
    %c0_i32_1 = arith.constant 0 : i32
    return %c0_i32, %c0_i32_0 : i32, i32
  }
  func.func @transform_3(%arg0: i32) -> (i32, i32, i32) {
    %c0_i32 = arith.constant 0 : i32
    %c0_i32_0 = arith.constant 0 : i32
    %c0_i32_1 = arith.constant 0 : i32
    %c0_i32_2 = arith.constant 0 : i32
    return %c0_i32, %c0_i32_0, %c0_i32_1 : i32, i32, i32
  }
  func.func @transform_4(%arg0: i32) -> (i32, i32, i32) {
    %c0_i32 = arith.constant 0 : i32
    %c0_i32_0 = arith.constant 0 : i32
    %c0_i32_1 = arith.constant 0 : i32
    %c0_i32_2 = arith.constant 0 : i32
    return %c0_i32, %c0_i32_0, %c0_i32_1 : i32, i32, i32
  }
  func.func @transform_5(%arg0: i32) -> (i32, i32, i32) {
    %c0_i32 = arith.constant 0 : i32
    %c0_i32_0 = arith.constant 0 : i32
    %c0_i32_1 = arith.constant 0 : i32
    %c0_i32_2 = arith.constant 0 : i32
    return %c0_i32, %c0_i32_0, %c0_i32_1 : i32, i32, i32
  }
  func.func @transform_6(%arg0: i32) -> (i32, i32, i32) {
    %c0_i32 = arith.constant 0 : i32
    %c0_i32_0 = arith.constant 0 : i32
    %c0_i32_1 = arith.constant 0 : i32
    %c0_i32_2 = arith.constant 0 : i32
    return %c0_i32, %c0_i32_0, %c0_i32_1 : i32, i32, i32
  }
  func.func @transform_7(%arg0: i32) -> (i32, i32) {
    %c0_i32 = arith.constant 0 : i32
    %c0_i32_0 = arith.constant 0 : i32
    %c0_i32_1 = arith.constant 0 : i32
    return %c0_i32, %c0_i32_0 : i32, i32
  }
  func.func @transform_8(%arg0: i32) -> (i32, i32) {
    %c0_i32 = arith.constant 0 : i32
    %c0_i32_0 = arith.constant 0 : i32
    %c0_i32_1 = arith.constant 0 : i32
    return %c0_i32, %c0_i32_0 : i32, i32
  }
  func.func @transform_9(%arg0: i32) -> (i32, i32) {
    %c0_i32 = arith.constant 0 : i32
    %c0_i32_0 = arith.constant 0 : i32
    %c0_i32_1 = arith.constant 0 : i32
    return %c0_i32, %c0_i32_0 : i32, i32
  }
  func.func @transform_10(%arg0: i32) -> (i32, i32) {
    %c0_i32 = arith.constant 0 : i32
    %c0_i32_0 = arith.constant 0 : i32
    %c0_i32_1 = arith.constant 0 : i32
    return %c0_i32, %c0_i32_0 : i32, i32
  }
  func.func @transform_11(%arg0: i32) -> (i32, i32) {
    %c0_i32 = arith.constant 0 : i32
    %c0_i32_0 = arith.constant 0 : i32
    %c0_i32_1 = arith.constant 0 : i32
    return %c0_i32, %c0_i32_0 : i32, i32
  }
  func.func @transform_12(%arg0: i32) -> (i32, i32) {
    %c0_i32 = arith.constant 0 : i32
    %c0_i32_0 = arith.constant 0 : i32
    %c0_i32_1 = arith.constant 0 : i32
    return %c0_i32, %c0_i32_0 : i32, i32
  }
  func.func @transform_13(%arg0: i32) -> (i32, i32) {
    %c0_i32 = arith.constant 0 : i32
    %c0_i32_0 = arith.constant 0 : i32
    %c0_i32_1 = arith.constant 0 : i32
    return %c0_i32, %c0_i32_0 : i32, i32
  }
  func.func @transform_14(%arg0: i32) -> (i32, i32, i32) {
    %c0_i32 = arith.constant 0 : i32
    %c0_i32_0 = arith.constant 0 : i32
    %c0_i32_1 = arith.constant 0 : i32
    return %arg0, %c0_i32, %c0_i32_0 : i32, i32, i32
  }
}

module attributes {stable_mosaic.version = 11 : i64} {
  func.func @_cls_norm_kernel(%arg0: memref<2x32xf32, #tpu.memory_space<vmem>>, %arg1: memref<1x32xf32, #tpu.memory_space<vmem>>, %arg2: memref<1x32xf32, #tpu.memory_space<vmem>>, %arg3: memref<2x32xf32, #tpu.memory_space<vmem>>) attributes {dimension_semantics = [], scalar_prefetch = 0 : i64, scratch_operands = 0 : i64, tpu.core_type = #tpu.core_type<tc>} {
    %c0 = arith.constant 0 : index
    %c0_0 = arith.constant 0 : index
    %0 = vector.load %arg0[%c0, %c0_0] : memref<2x32xf32, #tpu.memory_space<vmem>>, vector<2x32xf32>
    %c0_1 = arith.constant 0 : index
    %c0_2 = arith.constant 0 : index
    %1 = vector.load %arg1[%c0_1, %c0_2] : memref<1x32xf32, #tpu.memory_space<vmem>>, vector<1x32xf32>
    %c0_3 = arith.constant 0 : index
    %c0_4 = arith.constant 0 : index
    %2 = vector.load %arg2[%c0_3, %c0_4] : memref<1x32xf32, #tpu.memory_space<vmem>>, vector<1x32xf32>
    %cst = arith.constant dense<0.000000e+00> : vector<2xf32>
    %3 = vector.multi_reduction <add>, %0, %cst [1] : vector<2x32xf32> to vector<2xf32>
    %4 = vector.shape_cast %3 : vector<2xf32> to vector<2x1xf32>
    %cst_5 = arith.constant 3.200000e+01 : f32
    %5 = vector.broadcast %cst_5 : f32 to vector<2x1xf32>
    %6 = arith.divf %4, %5 : vector<2x1xf32>
    %7 = vector.broadcast %6 : vector<2x1xf32> to vector<2x32xf32>
    %8 = arith.subf %0, %7 : vector<2x32xf32>
    %9 = arith.mulf %8, %8 : vector<2x32xf32>
    %cst_6 = arith.constant dense<0.000000e+00> : vector<2xf32>
    %10 = vector.multi_reduction <add>, %9, %cst_6 [1] : vector<2x32xf32> to vector<2xf32>
    %11 = vector.shape_cast %10 : vector<2xf32> to vector<2x1xf32>
    %cst_7 = arith.constant 3.200000e+01 : f32
    %12 = vector.broadcast %cst_7 : f32 to vector<2x1xf32>
    %13 = arith.divf %11, %12 : vector<2x1xf32>
    %14 = vector.broadcast %6 : vector<2x1xf32> to vector<2x32xf32>
    %15 = arith.subf %0, %14 : vector<2x32xf32>
    %cst_8 = arith.constant 9.99999974E-6 : f32
    %16 = vector.broadcast %cst_8 : f32 to vector<2x1xf32>
    %17 = arith.addf %13, %16 : vector<2x1xf32>
    %18 = math.rsqrt %17 : vector<2x1xf32>
    %19 = vector.broadcast %18 : vector<2x1xf32> to vector<2x32xf32>
    %20 = arith.mulf %15, %19 : vector<2x32xf32>
    %21 = vector.broadcast %1 : vector<1x32xf32> to vector<2x32xf32>
    %22 = arith.mulf %20, %21 : vector<2x32xf32>
    %23 = vector.broadcast %2 : vector<1x32xf32> to vector<2x32xf32>
    %24 = arith.addf %22, %23 : vector<2x32xf32>
    %c0_9 = arith.constant 0 : index
    %c0_10 = arith.constant 0 : index
    %25 = vector.load %arg3[%c0_9, %c0_10] : memref<2x32xf32, #tpu.memory_space<vmem>>, vector<2x32xf32>
    tpu.vector_store %arg3[%c0_9, %c0_10], %24 {strides = array<i32>} : memref<2x32xf32, #tpu.memory_space<vmem>>, vector<2x32xf32>,
    return
  }
}

</mosaic_0001>

<bundles_post_ra>
// kernel: vit_forward.7
= control target key start
LH: loop header
LB: loop body
LE: loop exit
PB: predicated region body
PF: predicated region fallthrough
CT: control target
= control target key end

     0   :  { %vm18_vm0 = vcmask 254976   ;;  %s125_s0 = inlined_call_operand.vmem [shape: f32[2,32], index: 0, kind: input, shape index: {}]   ;;  %s126_s1 = inlined_call_operand.vmem [shape: f32[1,32], index: 1, kind: input, shape index: {}]   ;;  %s127_s2 = inlined_call_operand.vmem [shape: f32[1,32], index: 2, kind: input, shape index: {}]   ;;  %s128_s3 = inlined_call_operand.hbm [shape: f32[2,32], index: 3, kind: output, shape index: {}]  }
   0x1   :  { %v15_v0 = vld [vmem:[%s125_s0] sm:$0x3] }
   0x2   :  { %8 = vsyncpa [#allocation3], 0  ;;  %v19_v1 = vsel %vm18_vm0, %v15_v0, 0.0  ;;  %v62_v11 = vld [vmem:[%s126_s1] ss:$0 sm:$0xff]  ;;  %s89_s17 = smov [#allocation2]  }
   0x3   :  { %20 = vadd.xlane.f32.xlu0 %v19_v1  ;;  %v63_v13 = vld [vmem:[%s127_s2] ss:$0 sm:$0xff]  ;;  %s54_s18 = sshll.u32 %s89_s17, 4  ;;  %s55_s18 = int_to_ptr.vmem [resolvable:$true] %s54_s18 }
   0x4   :  { %s67_s19 = scalar_lea.vmem %s55_s18, 32  ;;  %p72_p1 = scmp.lt.s32.totalorder %s55_s18, %s55_s18 }
   0x5   :  { %p68_p0 = scmp.ne.s32.totalorder %s55_s18, %s67_s19  ;;  %p73_p2 = scmp.lt.s32.totalorder %s67_s19, %s67_s19 }
   0x7   :  { %p74_p3 = por %p73_p2, %p72_p1 }
   0x9   :  { %p75_p4 = pnand %p74_p3, %p68_p0 }
  0x8c   :  { %v21_v2 = vpop.xlane.xlu0 %20 }
  0x8d   :  { %v23_v3 = vmul.f32 0.03125, %v21_v2 }
  0x8f   :  { %v24_v4 = vsub.f32 %v15_v0, %v23_v3 }
  0x91   :  { %v25_v5 = vmul.f32 %v24_v4, %v24_v4 }
  0x93   :  { %v26_v6 = vsel %vm18_vm0, %v25_v5, 0.0 }
  0x94   :  { %27 = vadd.xlane.f32.xlu0 %v26_v6 }
 0x11d   :  { %v28_v7 = vpop.xlane.xlu0 %27 }
 0x11e   :  { %v29_v8 = vmul.f32 0.03125, %v28_v7 }
 0x120   :  { %v30_v9 = vadd.f32 1e-05, %v29_v8 }
 0x122   :  { %65 = vrsqrt.f32 %v30_v9 }
 0x12f   :  { %v66_v10 = vpop.eup %65 }
 0x130   :  { %v32_v12 = vmul.f32 %v66_v10, %v24_v4 }
 0x132   :  { %v39_v14 = vmul.f32 %v62_v11, %v32_v12 }
 0x134   :  { %v46_v15 = vadd.f32 %v63_v13, %v39_v14 }
 0x136   :  { %47 = vst.msk [vmem:[#allocation2] sm:$0x3] %vm18_vm0, %v46_v15 }
 0x137   :  { %78 = shalt.err (!%p75_p4)
}
 0x138   :  { %57 = dma.vmem_to_hbm [thread:$0]  %s55_s18, 32, %s128_s3, [#allocation3]  }
 0x139   :  { %87 = dma.done.wait [#allocation3], 32  }
 0x13a   :  { %88 = vsyncadd [#allocation3], 4294967264 }
 0x13b   :  { %61 = vsyncpa [#allocation3], 1 }

// kernel: vit_forward.4
= control target key start
LH: loop header
LB: loop body
LE: loop exit
PB: predicated region body
PF: predicated region fallthrough
CT: control target
= control target key end

     0   :  { %s567_s15 = smov 0   ;;  %s569_s16 = smov 0   ;;  %s618_s0 = inlined_call_operand.vmem [shape: bf16[2,16,48], index: 0, kind: input, shape index: {}]   ;;  %s619_s1 = inlined_call_operand.vmem [shape: bf16[48,32], index: 1, kind: input, shape index: {}]   ;;  %s620_s2 = inlined_call_operand.vmem [shape: f32[1,32], index: 2, kind: input, shape index: {}]   ;;  %s621_s3 = inlined_call_operand.vmem [shape: f32[1,16,32], index: 3, kind: input, shape index: {}]   ;;  %s622_s4 = inlined_call_operand.vmem [shape: f32[2,16,32], index: 4, kind: output, shape index: {}]  }
   0x1   :  { %s571_s17 = smov 0  }
   0x2 LB: > { %s26_s18 = sadd.s32 1, %s534_s16  ;;  %p457_p0 = scmp.ge.s32.totalorder %s538_s17, 1  ;;  %s538_s17 = sphi %s571_s17, %s14_s17   ;;  %s534_s16 = sphi %s569_s16, %s624_s16   ;;  %s530_s15 = sphi %s567_s15, %s623_s15  }
   0x3   : > { %p28_p1 = scmp.ge.s32.totalorder %s26_s18, 2  ;;  %p194_p2 = scmp.lt.s32.totalorder %s538_s17, 3 }
   0x5   : > { %s626_s18 = smov (%p28_p1, %s26_s18), 0  ;;  %p195_p3 = pnand %p457_p0, %p194_p2 }
   0x6   : > { %p234_p4 = scmp.lt.s32.totalorder (!%p195_p3), %s530_s15, 1 }
   0x7   : > { %198 = sbr.rel (%p195_p3) target bundleno = 227 (0xe3), region = 36 }
   0xc   : > { %v512_v0 = vld [vmem:[%s619_s1 + $0x10] sm:$0xff]   ;;  %v540_v1 = vmov 0.0   ;;  %v513_v2 = vld [vmem:[%s619_s1 + $0x8] sm:$0xff]   ;;  %vm541_vm0 = vmmov 0   ;;  %s628_s15 = smov (!%p234_p4, %s530_s15), 1  ;;  %v514_v3 = vld [vmem:[%s619_s1] sm:$0xff]  }
   0xd   : > { %476 = vmatprep.subr.bf16.mxu0 %v540_v1  ;;  %482 = vmatprep.mubr.msk.bf16.mxu0 %vm541_vm0, %v540_v1  ;;  %s470_s25 = sshll.u32 %s628_s15, 3  ;;  %vm298_vm1 = vcmask 392192   ;;  %v462_v5 = vld [vmem:[%s620_s2] ss:$0 sm:$0xff]  ;;  %s471_s5 = sshll.u32 %s628_s15, 4  ;;  %vm347_vm2 = vcmask 261120  }
   0xe   : > { %477 = vmatpush3.bf16.msra.mxu0 %v512_v0  ;;  %s241_s28 = scalar_lea.vmem %s618_s0, %s470_s25  ;;  %v343_v7 = vld [vmem:[%s621_s3] sm:$0xff]  ;;  %s257_s10 = scalar_lea.vmem %s622_s4, %s471_s5  ;;  %v344_v12 = vld [vmem:[%s621_s3 + $0x8] sm:$0xff] }
   0xf   : > { %478 = vmatprep.subr.bf16.mxu0 %v540_v1  ;;  %v515_v4 = vld [vmem:[%s241_s28] sm:$0xff]  }
  0x12   : > { %479 = vmatpush3.bf16.msra.mxu0 %v513_v2 }
  0x13   : > { %480 = vmatprep.subr.bf16.mxu0 %v540_v1 }
  0x16   : > { %481 = vmatpush3.bf16.msra.mxu0 %v514_v3 }
  0x19   : > { %483 = vmatmul.mubr.msk.bf16.vlgmr.msra.gmra.mxu0 %vm298_vm1, %v515_v4 }
  0xd9   : > { %v336_v6 = vpop.f32.mrf.mxu0 }
  0xda   : > { %v337_v8 = vadd.f32 %v462_v5, %v336_v6 }
  0xdb   : > { %v484_v9 = vpop.f32.mrf.mxu0 }
  0xdc   : > { %v345_v10 = vadd.f32 %v343_v7, %v337_v8 }
  0xdd   : > { %v339_v11 = vpop.f32.mrf.mxu0 }
  0xde   : > { %348 = vst.msk [vmem:[%s257_s10] sm:$0xff] %vm347_vm2, %v345_v10  ;;  %v340_v13 = vadd.f32 %v462_v5, %v339_v11 }
  0xdf   : > { %v485_v14 = vpop.f32.mrf.mxu0 }
  0xe0   : > { %v346_v15 = vadd.f32 %v344_v12, %v340_v13 }
  0xe2   : > { %349 = vst.msk [vmem:[%s257_s10 + $0x8] sm:$0xff] %vm347_vm2, %v346_v15 }
  0xe3 PF: > { %s14_s17 = sadd.s32 1, %s538_s17   ;;  %s623_s15 = smov %s534_s16 }
  0xe4   : > { %p11_p5 = scmp.ge.s32.totalorder %s14_s17, 4   ;;  %s624_s16 = smov %s626_s18 }
  0xe6   :  { %13 = sbr.rel (!%p11_p5) target bundleno = 2 (0x2), region = 69 }

// kernel: vit_forward.5
= control target key start
LH: loop header
LB: loop body
LE: loop exit
PB: predicated region body
PF: predicated region fallthrough
CT: control target
= control target key end

     0   :  { %s3224_s29 = smov 0   ;;  %s3679_s0 = inlined_call_operand.vmem [shape: f32[2,24,32], index: 0, kind: input, shape index: {}]   ;;  %s3680_s1 = inlined_call_operand.vmem [shape: f32[1,32], index: 1, kind: input, shape index: {}]   ;;  %s3681_s2 = inlined_call_operand.vmem [shape: f32[1,32], index: 2, kind: input, shape index: {}]   ;;  %s3682_s3 = inlined_call_operand.vmem [shape: bf16[4,32,8], index: 3, kind: input, shape index: {}]   ;;  %s3683_s4 = inlined_call_operand.vmem [shape: bf16[4,32,8], index: 4, kind: input, shape index: {}]   ;;  %s3684_s5 = inlined_call_operand.vmem [shape: bf16[4,32,8], index: 5, kind: input, shape index: {}]   ;;  %s3685_s6 = inlined_call_operand.vmem [shape: bf16[4,8,32], index: 6, kind: input, shape index: {}]   ;;  %s3686_s7 = inlined_call_operand.vmem [shape: f32[1,32], index: 7, kind: input, shape index: {}]   ;;  %s3687_s8 = inlined_call_operand.vmem [shape: f32[1,32], index: 8, kind: input, shape index: {}]   ;;  %s3688_s9 = inlined_call_operand.vmem [shape: f32[1,32], index: 9, kind: input, shape index: {}]   ;;  %s3689_s10 = inlined_call_operand.vmem [shape: bf16[32,128], index: 10, kind: input, shape index: {}]   ;;  %s3690_s11 = inlined_call_operand.vmem [shape: f32[1,128], index: 11, kind: input, shape index: {}]   ;;  %s3691_s12 = inlined_call_operand.vmem [shape: bf16[128,32], index: 12, kind: input, shape index: {}]   ;;  %s3692_s13 = inlined_call_operand.vmem [shape: f32[1,32], index: 13, kind: input, shape index: {}]   ;;  %s3693_s14 = inlined_call_operand.vmem [shape: f32[2,24,32], index: 14, kind: output, shape index: {}]  }
   0x1 LB: > { %s2593_s30 = sadd.s32 4294967295, %s3146_s29   ;;  %p2597_p0 = scmp.ge.s32.totalorder %s3146_s29, 1  ;;  %s3146_s29 = sphi %s3224_s29, %s24_s29  }
   0x2   : > { %p412_p1 = scmp.lt.s32.totalorder %s3146_s29, 3 }
   0x4   : > { %p413_p2 = pnand %p2597_p0, %p412_p1 }
   0x5   : > { %p458_p3 = scmp.lt.s32.totalorder (!%p413_p2), %s2593_s30, 1 }
   0x6   : > { %416 = sbr.rel (%p413_p2) target bundleno = 2259 (0x8d3), region = 76 }
   0xb   : > { %s3695_s30 = smov (!%p458_p3, %s2593_s30), 1  ;;  %vm474_vm0 = vcmask 261120   ;;  %v3037_v21 = vld [vmem:[%s3682_s3 + $0x8] sm:$0xff]   ;;  %v3038_v22 = vld [vmem:[%s3682_s3 + $0x38] sm:$0xff]   ;;  %v3039_v23 = vld [vmem:[%s3682_s3] sm:$0xff]   ;;  %vm1325_vm1 = vcmask 64512  }
   0xc   : > { %s3027_s15 = smul.u32 24, %s3695_s30  ;;  %2799 = vmatprep.subr.bf16.mxu0 %v3037_v21  ;;  %2823 = vmatprep.subr.bf16.mxu1 %v3038_v22  ;;  %v3040_v24 = vld [vmem:[%s3682_s3 + $0x30] sm:$0xff]   ;;  %v3041_v25 = vld [vmem:[%s3682_s3 + $0x18] sm:$0xff]   ;;  %v2600_v38 = vld [vmem:[%s3680_s1] ss:$0 sm:$0xff]  ;;  %vm1749_vm2 = vcmask 1043456  }
   0xd   : > { %2800 = vmatpush3.bf16.msra.mxu0 %v3037_v21  ;;  %2824 = vmatpush3.bf16.msra.mxu1 %v3038_v22  ;;  %v3042_v26 = vld [vmem:[%s3683_s4 + $0x18] sm:$0xff]   ;;  %v2601_v44 = vld [vmem:[%s3681_s2] ss:$0 sm:$0xff]  ;;  %v3043_v52 = vld [vmem:[%s3682_s3 + $0x10] sm:$0xff]   ;;  %vm1594_vm4 = vcmask 195584  }
   0xe   : > { %s3240_s18 = scalar_lea.vmem %s3679_s0, %s3027_s15  ;;  %2801 = vmatprep.subr.bf16.mxu0 %v3039_v23  ;;  %2825 = vmatprep.subr.bf16.mxu1 %v3040_v24  ;;  %v3044_v53 = vld [vmem:[%s3683_s4 + $0x10] sm:$0xff]   ;;  %v3045_v54 = vld [vmem:[%s3682_s3 + $0x28] sm:$0xff]   ;;  %v3046_v55 = vld [vmem:[%s3683_s4 + $0x38] sm:$0xff]   ;;  %s467_s24 = scalar_lea.vmem %s3693_s14, %s3027_s15 }
   0xf   : > { %v469_v0 = vld [vmem:[%s3240_s18] sm:$0xff]  ;;  %v471_v1 = vld [vmem:[%s3240_s18 + $0x10] sm:$0xff]  ;;  %v470_v2 = vld [vmem:[%s3240_s18 + $0x8] sm:$0xff] }
  0x10   : > { %v475_v3 = vsel %vm474_vm0, %v469_v0, 0.0  ;;  %v481_v4 = vsel %vm474_vm0, %v471_v1, 0.0  ;;  %v478_v5 = vsel %vm474_vm0, %v470_v2, 0.0  ;;  %v3047_v56 = vld [vmem:[%s3682_s3 + $0x20] sm:$0xff]   ;;  %v3048_v57 = vld [vmem:[%s3683_s4 + $0x30] sm:$0xff]   ;;  %v3049_v58 = vld [vmem:[%s3683_s4 + $0x8] sm:$0xff]  }
  0x11   : > { %476 = vadd.xlane.f32.xlu0 %v475_v3  ;;  %482 = vadd.xlane.f32.xlu1 %v481_v4  ;;  %v3050_v59 = vld [vmem:[%s3684_s5 + $0x18] sm:$0xff]   ;;  %v3051_v60 = vld [vmem:[%s3683_s4] sm:$0xff]   ;;  %v3052_v61 = vld [vmem:[%s3684_s5 + $0x10] sm:$0xff]  }
  0x12   : > { %2802 = vmatpush3.bf16.msra.mxu0 %v3039_v23  ;;  %2826 = vmatpush3.bf16.msra.mxu1 %v3040_v24  ;;  %v3053_v62 = vld [vmem:[%s3683_s4 + $0x28] sm:$0xff]   ;;  %v3054_v63 = vld [vmem:[%s3684_s5 + $0x38] sm:$0xff]   ;;  %v3058_v3 = vld [vmem:[%s3684_s5] sm:$0xff]  }
  0x13   : > { %2807 = vmatprep.subr.bf16.mxu0 %v3041_v25  ;;  %2839 = vmatprep.subr.bf16.mxu1 %v3042_v26  ;;  %v3059_v4 = vld [vmem:[%s3684_s5 + $0x28] sm:$0xff]  }
  0x15   : > { %479 = vadd.xlane.f32.xlu0 %v478_v5  ;;  %v3060_v5 = vld [vmem:[%s3684_s5 + $0x20] sm:$0xff]  }
  0x9a   : > { %v477_v6 = vpop.xlane.xlu0 %476  ;;  %v483_v7 = vpop.xlane.xlu1 %482 }
  0x9b   : > { %v485_v8 = vmul.f32 0.03125, %v477_v6  ;;  %v487_v9 = vmul.f32 0.03125, %v483_v7 }
  0x9d   : > { %v488_v10 = vsub.f32 %v469_v0, %v485_v8  ;;  %v490_v11 = vsub.f32 %v471_v1, %v487_v9  ;;  %v3055_v0 = vld [vmem:[%s3683_s4 + $0x20] sm:$0xff]   ;;  %v3056_v1 = vld [vmem:[%s3684_s5 + $0x30] sm:$0xff]  }
  0x9e   : > { %v480_v12 = vpop.xlane.xlu0 %479 }
  0x9f   : > { %v486_v13 = vmul.f32 0.03125, %v480_v12  ;;  %v491_v14 = vmul.f32 %v488_v10, %v488_v10  ;;  %v493_v15 = vmul.f32 %v490_v11, %v490_v11 }
  0xa1   : > { %v489_v16 = vsub.f32 %v470_v2, %v486_v13  ;;  %v494_v17 = vsel %vm474_vm0, %v491_v14, 0.0  ;;  %v500_v18 = vsel %vm474_vm0, %v493_v15, 0.0  ;;  %v3057_v2 = vld [vmem:[%s3684_s5 + $0x8] sm:$0xff]  }
  0xa2   : > { %495 = vadd.xlane.f32.xlu1 %v494_v17 }
  0xa3   : > { %v492_v19 = vmul.f32 %v489_v16, %v489_v16 }
  0xa5   : > { %v497_v20 = vsel %vm474_vm0, %v492_v19, 0.0 }
  0xa6   : > { %501 = vadd.xlane.f32.xlu1 %v500_v18  ;;  %498 = vadd.xlane.f32.xlu0 %v497_v20 }
 0x12b   : > { %v496_v27 = vpop.xlane.xlu1 %495 }
 0x12c   : > { %v503_v28 = vmul.f32 0.03125, %v496_v27 }
 0x12e   : > { %v506_v29 = vadd.f32 1e-05, %v503_v28 }
 0x12f   : > { %v502_v30 = vpop.xlane.xlu1 %501  ;;  %v499_v31 = vpop.xlane.xlu0 %498 }
 0x130   : > { %3071 = vrsqrt.f32 %v506_v29  ;;  %v505_v32 = vmul.f32 0.03125, %v502_v30  ;;  %v504_v33 = vmul.f32 0.03125, %v499_v31 }
 0x132   : > { %v508_v34 = vadd.f32 1e-05, %v505_v32  ;;  %v507_v35 = vadd.f32 1e-05, %v504_v33 }
 0x134   : > { %3073 = vrsqrt.f32 %v508_v34 }
 0x135   : > { %3075 = vrsqrt.f32 %v507_v35 }
 0x13d   : > { %v3072_v36 = vpop.eup %3071 }
 0x13e   : > { %v512_v37 = vmul.f32 %v3072_v36, %v488_v10 }
 0x140   : > { %v521_v42 = vmul.f32 %v2600_v38, %v512_v37 }
 0x141   : > { %v3074_v39 = vpop.eup %3073 }
 0x142   : > { %v3076_v40 = vpop.eup %3075  ;;  %v514_v41 = vmul.f32 %v3074_v39, %v490_v11  ;;  %v530_v48 = vadd.f32 %v2601_v44, %v521_v42 }
 0x143   : > { %v513_v43 = vmul.f32 %v3076_v40, %v489_v16 }
 0x144   : > { %v523_v45 = vmul.f32 %v2600_v38, %v514_v41 }
 0x145   : > { %v522_v46 = vmul.f32 %v2600_v38, %v513_v43 }
 0x146   : > { %v532_v47 = vadd.f32 %v2601_v44, %v523_v45 }
 0x147   : > { %v531_v49 = vadd.f32 %v2601_v44, %v522_v46 }
 0x148   : > { %v3275_v50 = vpack.c.bf16 %v532_v47, %v532_v47 }
 0x149   : > { %v3277_v51 = vpack.c.bf16 %v531_v49, %v530_v48 }
 0x14b   : > { %2803 = vmatprep.mubr.msk.bf16.mxu0 %vm474_vm0, %v3277_v51  ;;  %2827 = vmatprep.mubr.msk.bf16.mxu1 %vm474_vm0, %v3277_v51 }
 0x14c   : > { %2804 = vmatmul.mubr.msk.bf16.vlgmr.msra.gmra.mxu0 %vm474_vm0, %v3275_v50  ;;  %2828 = vmatmul.mubr.msk.bf16.vlgmr.msra.gmra.mxu1 %vm474_vm0, %v3275_v50 }
 0x14d   : > { %2808 = vmatpush3.bf16.msra.mxu0 %v3041_v25  ;;  %2811 = vmatprep.mubr.msk.bf16.mxu0 %vm474_vm0, %v3277_v51 }
 0x14e   : > { %2840 = vmatpush3.bf16.msra.mxu1 %v3042_v26  ;;  %2843 = vmatprep.mubr.msk.bf16.mxu1 %vm474_vm0, %v3277_v51 }
 0x14f   : > { %2809 = vmatprep.subr.bf16.mxu0 %v3043_v52  ;;  %2841 = vmatprep.subr.bf16.mxu1 %v3044_v53 }
 0x151   : > { %2810 = vmatpush3.bf16.msra.mxu0 %v3043_v52 }
 0x152   : > { %2842 = vmatpush3.bf16.msra.mxu1 %v3044_v53  ;;  %2815 = vmatprep.subr.bf16.mxu0 %v3045_v54 }
 0x153   : > { %2855 = vmatprep.subr.bf16.mxu1 %v3046_v55 }
 0x154   : > { %2812 = vmatmul.mubr.msk.bf16.vlgmr.msra.gmra.mxu0 %vm474_vm0, %v3275_v50 }
 0x155   : > { %2816 = vmatpush3.bf16.msra.mxu0 %v3045_v54  ;;  %2844 = vmatmul.mubr.msk.bf16.vlgmr.msra.gmra.mxu1 %vm474_vm0, %v3275_v50 }
 0x156   : > { %2819 = vmatprep.mubr.msk.bf16.mxu0 %vm474_vm0, %v3277_v51  ;;  %2856 = vmatpush3.bf16.msra.mxu1 %v3046_v55 }
 0x157   : > { %2859 = vmatprep.mubr.msk.bf16.mxu1 %vm474_vm0, %v3277_v51  ;;  %2817 = vmatprep.subr.bf16.mxu0 %v3047_v56 }
 0x158   : > { %2857 = vmatprep.subr.bf16.mxu1 %v3048_v57 }
 0x159   : > { %2818 = vmatpush3.bf16.msra.mxu0 %v3047_v56 }
 0x15a   : > { %2858 = vmatpush3.bf16.msra.mxu1 %v3048_v57  ;;  %2831 = vmatprep.subr.bf16.mxu0 %v3049_v58 }
 0x15b   : > { %2871 = vmatprep.subr.bf16.mxu1 %v3050_v59 }
 0x15c   : > { %2820 = vmatmul.mubr.msk.bf16.vlgmr.msra.gmra.mxu0 %vm474_vm0, %v3275_v50 }
 0x15d   : > { %2832 = vmatpush3.bf16.msra.mxu0 %v3049_v58  ;;  %2860 = vmatmul.mubr.msk.bf16.vlgmr.msra.gmra.mxu1 %vm474_vm0, %v3275_v50 }
 0x15e   : > { %2835 = vmatprep.mubr.msk.bf16.mxu0 %vm474_vm0, %v3277_v51  ;;  %2872 = vmatpush3.bf16.msra.mxu1 %v3050_v59 }
 0x15f   : > { %2875 = vmatprep.mubr.msk.bf16.mxu1 %vm474_vm0, %v3277_v51  ;;  %2833 = vmatprep.subr.bf16.mxu0 %v3051_v60 }
 0x160   : > { %2873 = vmatprep.subr.bf16.mxu1 %v3052_v61 }
 0x161   : > { %2834 = vmatpush3.bf16.msra.mxu0 %v3051_v60 }
 0x162   : > { %2874 = vmatpush3.bf16.msra.mxu1 %v3052_v61  ;;  %2847 = vmatprep.subr.bf16.mxu0 %v3053_v62 }
 0x163   : > { %2887 = vmatprep.subr.bf16.mxu1 %v3054_v63 }
 0x164   : > { %2836 = vmatmul.mubr.msk.bf16.vlgmr.msra.gmra.mxu0 %vm474_vm0, %v3275_v50 }
 0x165   : > { %2876 = vmatmul.mubr.msk.bf16.vlgmr.msra.gmra.mxu1 %vm474_vm0, %v3275_v50  ;;  %2848 = vmatpush3.bf16.msra.mxu0 %v3053_v62 }
 0x166   : > { %2851 = vmatprep.mubr.msk.bf16.mxu0 %vm474_vm0, %v3277_v51  ;;  %2888 = vmatpush3.bf16.msra.mxu1 %v3054_v63 }
 0x167   : > { %2891 = vmatprep.mubr.msk.bf16.mxu1 %vm474_vm0, %v3277_v51  ;;  %2849 = vmatprep.subr.bf16.mxu0 %v3055_v0 }
 0x168   : > { %2889 = vmatprep.subr.bf16.mxu1 %v3056_v1 }
 0x169   : > { %2850 = vmatpush3.bf16.msra.mxu0 %v3055_v0 }
 0x16a   : > { %2890 = vmatpush3.bf16.msra.mxu1 %v3056_v1  ;;  %2863 = vmatprep.subr.bf16.mxu0 %v3057_v2 }
 0x16c   : > { %2852 = vmatmul.mubr.msk.bf16.vlgmr.msra.gmra.mxu0 %vm474_vm0, %v3275_v50 }
 0x16d   : > { %2892 = vmatmul.mubr.msk.bf16.vlgmr.msra.gmra.mxu1 %vm474_vm0, %v3275_v50  ;;  %2864 = vmatpush3.bf16.msra.mxu0 %v3057_v2 }
 0x16e   : > { %2867 = vmatprep.mubr.msk.bf16.mxu0 %vm474_vm0, %v3277_v51  ;;  %2865 = vmatprep.subr.bf16.mxu0 %v3058_v3 }
 0x171   : > { %2866 = vmatpush3.bf16.msra.mxu0 %v3058_v3 }
 0x172   : > { %2879 = vmatprep.subr.bf16.mxu0 %v3059_v4 }
 0x174   : > { %2868 = vmatmul.mubr.msk.bf16.vlgmr.msra.gmra.mxu0 %vm474_vm0, %v3275_v50 }
 0x175   : > { %2880 = vmatpush3.bf16.msra.mxu0 %v3059_v4  ;;  %2883 = vmatprep.mubr.msk.bf16.mxu0 %vm474_vm0, %v3277_v51 }
 0x176   : > { %2881 = vmatprep.subr.bf16.mxu0 %v3060_v5 }
 0x179   : > { %2882 = vmatpush3.bf16.msra.mxu0 %v3060_v5 }
 0x17c   : > { %2884 = vmatmul.mubr.msk.bf16.vlgmr.msra.gmra.mxu0 %vm474_vm0, %v3275_v50 }
 0x20c   : > { %v3381_v6 = vpop.f32.mrf.mxu0  ;;  %v3383_v7 = vpop.f32.mrf.mxu1 }
 0x20d   : > { %v1310_v0 = vpack.c.bf16 %v3381_v6, %v3381_v6  ;;  %v1316_v1 = vpack.c.bf16 %v3383_v7, %v3383_v7 }
 0x20e   : > { %v603_v8 = vpop.f32.mrf.mxu0  ;;  %v783_v9 = vpop.f32.mrf.mxu1 }
 0x210   : > { %v2806_v10 = vpop.f32.mrf.mxu0  ;;  %v2830_v11 = vpop.f32.mrf.mxu1 }
 0x212   : > { %v606_v12 = vpop.f32.mrf.mxu0  ;;  %v786_v13 = vpop.f32.mrf.mxu1 }
 0x213   : > { %v1309_v14 = vpack.c.bf16 %v606_v12, %v603_v8  ;;  %v1315_v42 = vpack.c.bf16 %v786_v13, %v783_v9 }
 0x214   : > { %v2813_v15 = vpop.f32.mrf.mxu0 }
 0x215   : > { %v2845_v16 = vpop.f32.mrf.mxu1  ;;  %2899 = vmatprep.mubr.msk.bf16.mxu0 %vm1325_vm1, %v1309_v14  ;;  %v1312_v40 = vpack.c.bf16 %v2813_v15, %v2813_v15 }
 0x216   : > { %v1320_v17 = vpack.c.bf16 %v2845_v16, %v2845_v16  ;;  %v663_v18 = vpop.f32.mrf.mxu0 }
 0x217   : > { %v919_v19 = vpop.f32.mrf.mxu1 }
 0x218   : > { %v1396_v20 = vsel %vm1325_vm1, %v1320_v17, 0  ;;  %3013 = vmatprep.subr.msk.bf16.mxu1 %vm1325_vm1, %v1320_v17  ;;  %v2814_v21 = vpop.f32.mrf.mxu0 }
 0x219   : > { %v2846_v22 = vpop.f32.mrf.mxu1  ;;  %2904 = vmatpush3.bf16.xpose.msra.mxu1 %v1396_v20  ;;  %v1578_v20 = vlaneseq }
 0x21a   : > { %v666_v23 = vpop.f32.mrf.mxu0 }
 0x21b   : > { %v1311_v24 = vpack.c.bf16 %v666_v23, %v663_v18  ;;  %v922_v25 = vpop.f32.mrf.mxu1  ;;  %v1579_v21 = vand.u32 127, %v1578_v20 }
 0x21c   : > { %v1319_v26 = vpack.c.bf16 %v922_v25, %v919_v19  ;;  %v3388_v27 = vpop.f32.mrf.mxu0 }
 0x21d   : > { %v2861_v28 = vpop.f32.mrf.mxu1  ;;  %2907 = vmatprep.mubr.msk.bf16.mxu1 %vm1325_vm1, %v1311_v24  ;;  %v1314_v16 = vpack.c.bf16 %v3388_v27, %v3388_v27  ;;  %vm1580_vm3 = vcmp.lt.s32.totalorder %v1579_v21, 17  ;;  %v3148_v24 = vmov -1e+30  }
 0x21e   : > { %3014 = vmatprep.subr.msk.bf16.mxu1 %vm1325_vm1, %v1319_v26  ;;  %v723_v29 = vpop.f32.mrf.mxu0  ;;  %v1393_v31 = vsel %vm1325_vm1, %v1319_v26, 0  ;;  %v1324_v32 = vpack.c.bf16 %v2861_v28, %v2861_v28  ;;  %v1581_v25 = vsel %vm1580_vm3, 0.0, %v3148_v24 }
 0x21f   : > { %v1039_v30 = vpop.f32.mrf.mxu1 }
 0x220   : > { %v2822_v33 = vpop.f32.mrf.mxu0  ;;  %v1516_v45 = vsel %vm1325_vm1, %v1324_v32, 0 }
 0x221   : > { %v2862_v34 = vpop.f32.mrf.mxu1  ;;  %2906 = vmatpush3.bf16.xpose.msra.mxu1 %v1393_v31 }
 0x222   : > { %3017 = vmatprep.subr.msk.bf16.mxu1 %vm1325_vm1, %v1324_v32  ;;  %v726_v35 = vpop.f32.mrf.mxu0 }
 0x223   : > { %v1042_v36 = vpop.f32.mrf.mxu1  ;;  %v1313_v3 = vpack.c.bf16 %v726_v35, %v723_v29 }
 0x224   : > { %v2837_v37 = vpop.f32.mrf.mxu0  ;;  %v1323_v46 = vpack.c.bf16 %v1042_v36, %v1039_v30 }
 0x225   : > { %v1318_v38 = vpack.c.bf16 %v2837_v37, %v2837_v37  ;;  %v2877_v39 = vpop.f32.mrf.mxu1 }
 0x226   : > { %v859_v41 = vpop.f32.mrf.mxu0  ;;  %v1513_v58 = vsel %vm1325_vm1, %v1323_v46, 0  ;;  %v1738_v59 = vpack.c.bf16 %v2877_v39, %v2877_v39 }
 0x227   : > { %v1336_v43 = vsel %vm1325_vm1, %v1318_v38, 0  ;;  %v1175_v44 = vpop.f32.mrf.mxu1  ;;  %3011 = vmatprep.subr.msk.bf16.mxu0 %vm1325_vm1, %v1318_v38 }
 0x228   : > { %2908 = vmatmul.mubr.msk.bf16.vlgmr.msra.gmra.mxu1 %vm1325_vm1, %v1312_v40  ;;  %v2838_v47 = vpop.f32.mrf.mxu0  ;;  %2896 = vmatpush3.bf16.xpose.msra.mxu0 %v1336_v43  ;;  %v1808_v5 = vsel %vm1749_vm2, %v1738_v59, 0 }
 0x229   : > { %v2878_v48 = vpop.f32.mrf.mxu1  ;;  %2920 = vmatpush3.bf16.xpose.msra.mxu1 %v1516_v45  ;;  %2923 = vmatprep.mubr.msk.bf16.mxu1 %vm1325_vm1, %v1315_v42 }
 0x22a   : > { %3018 = vmatprep.subr.msk.bf16.mxu1 %vm1325_vm1, %v1323_v46  ;;  %v862_v49 = vpop.f32.mrf.mxu0 }
 0x22b   : > { %v1317_v50 = vpack.c.bf16 %v862_v49, %v859_v41  ;;  %v1178_v51 = vpop.f32.mrf.mxu1 }
 0x22c   : > { %v2853_v52 = vpop.f32.mrf.mxu0  ;;  %v1737_v8 = vpack.c.bf16 %v1178_v51, %v1175_v44 }
 0x22d   : > { %v2893_v53 = vpop.f32.mrf.mxu1  ;;  %3012 = vmatprep.subr.msk.bf16.mxu0 %vm1325_vm1, %v1317_v50  ;;  %v1333_v55 = vsel %vm1325_vm1, %v1317_v50, 0  ;;  %v1322_v56 = vpack.c.bf16 %v2853_v52, %v2853_v52 }
 0x22e   : > { %v979_v54 = vpop.f32.mrf.mxu0  ;;  %v3417_v7 = vpack.c.bf16 %v2893_v53, %v2893_v53 }
 0x22f   : > { %v3402_v57 = vpop.f32.mrf.mxu1  ;;  %v1456_v4 = vsel %vm1325_vm1, %v1322_v56, 0 }
 0x230   : > { %v2854_v60 = vpop.f32.mrf.mxu0  ;;  %2898 = vmatpush3.bf16.xpose.msra.mxu0 %v1333_v55 }
 0x231   : > { %v2894_v61 = vpop.f32.mrf.mxu1  ;;  %2922 = vmatpush3.bf16.xpose.msra.mxu1 %v1513_v58  ;;  %3015 = vmatprep.subr.msk.bf16.mxu0 %vm1325_vm1, %v1322_v56 }
 0x232   : > { %3020 = vmatprep.subr.msk.bf16.mxu1 %vm1749_vm2, %v1738_v59  ;;  %v982_v62 = vpop.f32.mrf.mxu0 }
 0x233   : > { %v1321_v9 = vpack.c.bf16 %v982_v62, %v979_v54  ;;  %v3433_v22 = vpop.f32.mrf.mxu1 }
 0x234   : > { %v2869_v63 = vpop.f32.mrf.mxu0 }
 0x235   : > { %v1453_v13 = vsel %vm1325_vm1, %v1321_v9, 0  ;;  %v1736_v14 = vpack.c.bf16 %v2869_v63, %v2869_v63 }
 0x236   : > { %v1115_v2 = vpop.f32.mrf.mxu0 }
 0x237   : > { %2900 = vmatmul.mubr.msk.bf16.vlgmr.msra.gmra.mxu0 %vm1325_vm1, %v1310_v0  ;;  %v1751_v17 = vsel %vm1749_vm2, %v1736_v14, 0 }
 0x238   : > { %2924 = vmatmul.mubr.msk.bf16.vlgmr.msra.gmra.mxu1 %vm1325_vm1, %v1316_v1  ;;  %v2870_v10 = vpop.f32.mrf.mxu0  ;;  %2912 = vmatpush3.bf16.xpose.msra.mxu0 %v1456_v4 }
 0x239   : > { %2915 = vmatprep.mubr.msk.bf16.mxu0 %vm1325_vm1, %v1313_v3  ;;  %2936 = vmatpush3.bf16.msra.mxu1 %v1808_v5 }
 0x23a   : > { %3016 = vmatprep.subr.msk.bf16.mxu0 %vm1325_vm1, %v1321_v9  ;;  %2937 = vmatprep.subr.bf16.mxu1 %v1737_v8  ;;  %v1118_v6 = vpop.f32.mrf.mxu0 }
 0x23b   : > { %v1735_v18 = vpack.c.bf16 %v1118_v6, %v1115_v2 }
 0x23c   : > { %v2885_v11 = vpop.f32.mrf.mxu0 }
 0x23d   : > { %2938 = vmatpush3.bf16.msra.mxu1 %v1737_v8  ;;  %v3429_v19 = vpack.c.bf16 %v2885_v11, %v2885_v11 }
 0x23e   : > { %3022 = vmatprep.subr.msk.bf16.mxu1 %vm1749_vm2, %v3417_v7  ;;  %v3421_v12 = vpop.f32.mrf.mxu0 }
 0x240   : > { %v2886_v15 = vpop.f32.mrf.mxu0  ;;  %2914 = vmatpush3.bf16.xpose.msra.mxu0 %v1453_v13 }
 0x241   : > { %3019 = vmatprep.subr.msk.bf16.mxu0 %vm1749_vm2, %v1736_v14 }
 0x242   : > { %v3447_v38 = vpop.f32.mrf.mxu0 }
 0x247   : > { %2916 = vmatmul.mubr.msk.bf16.vlgmr.msra.gmra.mxu0 %vm1325_vm1, %v1314_v16 }
 0x248   : > { %2928 = vmatpush3.bf16.msra.mxu0 %v1751_v17 }
 0x249   : > { %2929 = vmatprep.subr.bf16.mxu0 %v1735_v18 }
 0x24c   : > { %2930 = vmatpush3.bf16.msra.mxu0 %v1735_v18 }
 0x24d   : > { %3021 = vmatprep.subr.msk.bf16.mxu0 %vm1749_vm2, %v3429_v19 }
 0x2e8   : > { %v2909_v23 = vpop.f32.mrf.mxu1 }
 0x2e9   : > { %v1571_v26 = vmul.f32 0.35355338, %v2909_v23 }
 0x2ea   : > { %v1432_v27 = vpop.f32.mrf.mxu1 }
 0x2eb   : > { %v1569_v28 = vmul.f32 0.35355338, %v1432_v27  ;;  %v3435_v29 = vadd.f32 %v1581_v25, %v1571_v26 }
 0x2ec   : > { %v2910_v30 = vpop.f32.mrf.mxu1 }
 0x2ed   : > { %v1610_v31 = vsel %vm1594_vm4, %v3435_v29, -inf  ;;  %v3439_v32 = vadd.f32 %v1581_v25, %v1569_v28 }
 0x2ee   : > { %1611 = vmax.xlane.f32.xlu1 %v1610_v31  ;;  %v1435_v33 = vpop.f32.mrf.mxu1 }
 0x2ef   : > { %v1570_v34 = vmul.f32 0.35355338, %v1435_v33  ;;  %v1604_v35 = vsel %vm1594_vm4, %v3439_v32, -inf }
 0x2f1   : > { %v3443_v36 = vadd.f32 %v1581_v25, %v1570_v34 }
 0x2f2   : > { %1605 = vmax.xlane.f32.xlu1 %v1604_v35 }
 0x2f3   : > { %v1607_v37 = vsel %vm1594_vm4, %v3443_v36, -inf }
 0x2f4   : > { %1608 = vmax.xlane.f32.xlu0 %v1607_v37 }
 0x2f7   : > { %v2901_v39 = vpop.f32.mrf.mxu0 }
 0x2f8   : > { %v1568_v40 = vmul.f32 0.35355338, %v2901_v39  ;;  %v2925_v41 = vpop.f32.mrf.mxu1 }
 0x2f9   : > { %v1372_v42 = vpop.f32.mrf.mxu0  ;;  %v1577_v8 = vmul.f32 0.35355338, %v2925_v41 }
 0x2fa   : > { %v1566_v43 = vmul.f32 0.35355338, %v1372_v42  ;;  %v1552_v44 = vpop.f32.mrf.mxu1  ;;  %v1584_v45 = vadd.f32 %v1581_v25, %v1568_v40 }
 0x2fb   : > { %v2902_v46 = vpop.f32.mrf.mxu0  ;;  %v1575_v51 = vmul.f32 0.35355338, %v1552_v44  ;;  %v3467_v14 = vadd.f32 %v1581_v25, %v1577_v8 }
 0x2fc   : > { %v2926_v47 = vpop.f32.mrf.mxu1  ;;  %v1601_v48 = vsel %vm1594_vm4, %v1584_v45, -inf  ;;  %v1582_v49 = vadd.f32 %v1581_v25, %v1566_v43 }
 0x2fd   : > { %1602 = vmax.xlane.f32.xlu0 %v1601_v48  ;;  %v1375_v50 = vpop.f32.mrf.mxu0  ;;  %v3452_v56 = vadd.f32 %v1581_v25, %v1575_v51  ;;  %v1628_v16 = vsel %vm1594_vm4, %v3467_v14, -inf }
 0x2fe   : > { %v1567_v52 = vmul.f32 0.35355338, %v1375_v50  ;;  %v1595_v53 = vsel %vm1594_vm4, %v1582_v49, -inf  ;;  %v1555_v61 = vpop.f32.mrf.mxu1 }
 0x2ff   : > { %v1622_v58 = vsel %vm1594_vm4, %v3452_v56, -inf  ;;  %v1576_v2 = vmul.f32 0.35355338, %v1555_v61 }
 0x300   : > { %v1583_v54 = vadd.f32 %v1581_v25, %v1567_v52 }
 0x301   : > { %1596 = vmax.xlane.f32.xlu0 %v1595_v53  ;;  %v3463_v11 = vadd.f32 %v1581_v25, %v1576_v2 }
 0x302   : > { %v1598_v55 = vsel %vm1594_vm4, %v1583_v54, -inf }
 0x303   : > { %1599 = vmax.xlane.f32.xlu1 %v1598_v55  ;;  %v1625_v15 = vsel %vm1594_vm4, %v3463_v11, -inf }
 0x307   : > { %1623 = vmax.xlane.f32.xlu1 %v1622_v58  ;;  %v2917_v59 = vpop.f32.mrf.mxu0 }
 0x308   : > { %v1574_v60 = vmul.f32 0.35355338, %v2917_v59 }
 0x309   : > { %v1492_v62 = vpop.f32.mrf.mxu0 }
 0x30a   : > { %v1572_v63 = vmul.f32 0.35355338, %v1492_v62  ;;  %v1590_v0 = vadd.f32 %v1581_v25, %v1574_v60 }
 0x30b   : > { %v2918_v1 = vpop.f32.mrf.mxu0 }
 0x30c   : > { %v1619_v3 = vsel %vm1594_vm4, %v1590_v0, -inf  ;;  %v3457_v4 = vadd.f32 %v1581_v25, %v1572_v63 }
 0x30d   : > { %1620 = vmax.xlane.f32.xlu0 %v1619_v3  ;;  %v1495_v5 = vpop.f32.mrf.mxu0 }
 0x30e   : > { %v1573_v9 = vmul.f32 0.35355338, %v1495_v5  ;;  %v1613_v10 = vsel %vm1594_vm4, %v3457_v4, -inf }
 0x310   : > { %v3461_v6 = vadd.f32 %v1581_v25, %v1573_v9 }
 0x311   : > { %1614 = vmax.xlane.f32.xlu0 %v1613_v10 }
 0x312   : > { %v1616_v13 = vsel %vm1594_vm4, %v3461_v6, -inf }
 0x313   : > { %1617 = vmax.xlane.f32.xlu1 %v1616_v13 }
 0x315   : > { %1626 = vmax.xlane.f32.xlu0 %v1625_v15 }
 0x317   : > { %1629 = vmax.xlane.f32.xlu1 %v1628_v16 }
 0x377   : > { %v1612_v17 = vpop.xlane.xlu1 %1611 }
 0x378   : > { %v1636_v18 = vsub.f32 %v3435_v29, %v1612_v17 }
 0x37a   : > { %v1653_v20 = vmul.f32 1.442695, %v1636_v18 }
 0x37b   : > { %v1606_v21 = vpop.xlane.xlu1 %1605 }
 0x37c   : > { %3077 = vpow2.f32 %v1653_v20  ;;  %v1634_v23 = vsub.f32 %v3439_v32, %v1606_v21 }
 0x37d   : > { %v1609_v24 = vpop.xlane.xlu0 %1608 }
 0x37e   : > { %v1649_v25 = vmul.f32 1.442695, %v1634_v23  ;;  %v1635_v26 = vsub.f32 %v3443_v36, %v1609_v24 }
 0x380   : > { %3079 = vpow2.f32 %v1649_v25  ;;  %v1651_v27 = vmul.f32 1.442695, %v1635_v26 }
 0x382   : > { %3081 = vpow2.f32 %v1651_v27 }
 0x386   : > { %v1603_v28 = vpop.xlane.xlu0 %1602 }
 0x387   : > { %v1633_v30 = vsub.f32 %v1584_v45, %v1603_v28 }
 0x389   : > { %v3476_v31 = vpop.eup %3077  ;;  %v1647_v33 = vmul.f32 1.442695, %v1633_v30 }
 0x38a   : > { %v1597_v34 = vpop.xlane.xlu0 %1596  ;;  %v1682_v29 = vsel %vm1594_vm4, %v3476_v31, 0.0 }
 0x38b   : > { %3083 = vpow2.f32 %v1647_v33  ;;  %v1631_v35 = vsub.f32 %v1582_v49, %v1597_v34  ;;  %1683 = vadd.xlane.f32.xlu1 %v1682_v29 }
 0x38c   : > { %v1600_v32 = vpop.xlane.xlu1 %1599 }
 0x38d   : > { %v3480_v37 = vpop.eup %3079  ;;  %v1643_v39 = vmul.f32 1.442695, %v1631_v35  ;;  %v1632_v36 = vsub.f32 %v1583_v54, %v1600_v32 }
 0x38e   : > { %v1676_v40 = vsel %vm1594_vm4, %v3480_v37, 0.0 }
 0x38f   : > { %v3484_v41 = vpop.eup %3081  ;;  %3085 = vpow2.f32 %v1643_v39  ;;  %v1645_v42 = vmul.f32 1.442695, %v1632_v36  ;;  %1677 = vadd.xlane.f32.xlu1 %v1676_v40  ;;  %v1922_v39 = vsel %vm1749_vm2, %v3417_v7, 0  ;;  %v1741_v36 = vpack.c.bf16 %v3433_v22, %v3402_v57 }
 0x390   : > { %v1624_v43 = vpop.xlane.xlu1 %1623  ;;  %v1679_v44 = vsel %vm1594_vm4, %v3484_v41, 0.0 }
 0x391   : > { %3087 = vpow2.f32 %v1645_v42  ;;  %v1640_v45 = vsub.f32 %v3452_v56, %v1624_v43  ;;  %1680 = vadd.xlane.f32.xlu0 %v1679_v44 }
 0x393   : > { %v1661_v46 = vmul.f32 1.442695, %v1640_v45 }
 0x395   : > { %3089 = vpow2.f32 %v1661_v46 }
 0x396   : > { %v1621_v47 = vpop.xlane.xlu0 %1620 }
 0x397   : > { %v1639_v48 = vsub.f32 %v1590_v0, %v1621_v47 }
 0x398   : > { %v3489_v49 = vpop.eup %3083 }
 0x399   : > { %v1659_v50 = vmul.f32 1.442695, %v1639_v48  ;;  %v1673_v51 = vsel %vm1594_vm4, %v3489_v49, 0.0  ;;  %v1865_v48 = vsel %vm1749_vm2, %v3429_v19, 0 }
 0x39a   : > { %1674 = vadd.xlane.f32.xlu0 %v1673_v51  ;;  %v1615_v52 = vpop.xlane.xlu0 %1614 }
 0x39b   : > { %3091 = vpow2.f32 %v1659_v50  ;;  %v1637_v53 = vsub.f32 %v3457_v4, %v1615_v52 }
 0x39c   : > { %v3494_v54 = vpop.eup %3085  ;;  %v1618_v55 = vpop.xlane.xlu1 %1617 }
 0x39d   : > { %v1655_v56 = vmul.f32 1.442695, %v1637_v53  ;;  %v1638_v58 = vsub.f32 %v3461_v6, %v1618_v55  ;;  %v1667_v59 = vsel %vm1594_vm4, %v3494_v54, 0.0 }
 0x39e   : > { %v3499_v60 = vpop.eup %3087  ;;  %1668 = vadd.xlane.f32.xlu0 %v1667_v59  ;;  %v1627_v61 = vpop.xlane.xlu0 %1626 }
 0x39f   : > { %3093 = vpow2.f32 %v1655_v56  ;;  %v1657_v62 = vmul.f32 1.442695, %v1638_v58  ;;  %v1641_v63 = vsub.f32 %v3463_v11, %v1627_v61  ;;  %v1670_v0 = vsel %vm1594_vm4, %v3499_v60, 0.0 }
 0x3a0   : > { %1671 = vadd.xlane.f32.xlu1 %v1670_v0  ;;  %v1630_v1 = vpop.xlane.xlu1 %1629 }
 0x3a1   : > { %3095 = vpow2.f32 %v1657_v62  ;;  %v1663_v2 = vmul.f32 1.442695, %v1641_v63  ;;  %v1642_v3 = vsub.f32 %v3467_v14, %v1630_v1  ;;  %v1981_v1 = vld [vmem:[%s3685_s6 + $0x4] sm:$0xf] }
 0x3a2   : > { %v3505_v4 = vpop.eup %3089 }
 0x3a3   : > { %3097 = vpow2.f32 %v1663_v2  ;;  %v1665_v5 = vmul.f32 1.442695, %v1642_v3  ;;  %v1694_v8 = vsel %vm1594_vm4, %v3505_v4, 0.0  ;;  %v2048_v2 = vsel %vm1749_vm2, %v1981_v1, 0  ;;  %v1980_v3 = vld [vmem:[%s3685_s6] sm:$0xf] }
 0x3a4   : > { %1695 = vadd.xlane.f32.xlu1 %v1694_v8  ;;  %v1983_v8 = vld [vmem:[%s3685_s6 + $0xc] sm:$0xf] }
 0x3a5   : > { %3099 = vpow2.f32 %v1665_v5  ;;  %v1982_v5 = vld [vmem:[%s3685_s6 + $0x8] sm:$0xf] }
 0x3a8   : > { %v3509_v9 = vpop.eup %3091 }
 0x3a9   : > { %v1691_v10 = vsel %vm1594_vm4, %v3509_v9, 0.0 }
 0x3aa   : > { %1692 = vadd.xlane.f32.xlu0 %v1691_v10 }
 0x3ac   : > { %v3513_v6 = vpop.eup %3093 }
 0x3ad   : > { %v1685_v11 = vsel %vm1594_vm4, %v3513_v6, 0.0 }
 0x3ae   : > { %v3517_v13 = vpop.eup %3095  ;;  %1686 = vadd.xlane.f32.xlu0 %v1685_v11 }
 0x3af   : > { %v1688_v14 = vsel %vm1594_vm4, %v3517_v13, 0.0 }
 0x3b0   : > { %v3521_v15 = vpop.eup %3097  ;;  %1689 = vadd.xlane.f32.xlu1 %v1688_v14 }
 0x3b1   : > { %v1697_v16 = vsel %vm1594_vm4, %v3521_v15, 0.0 }
 0x3b2   : > { %v3525_v17 = vpop.eup %3099  ;;  %1698 = vadd.xlane.f32.xlu0 %v1697_v16 }
 0x3b3   : > { %v1700_v18 = vsel %vm1594_vm4, %v3525_v17, 0.0 }
 0x3b4   : > { %1701 = vadd.xlane.f32.xlu1 %v1700_v18 }
 0x414   : > { %v1684_v20 = vpop.xlane.xlu1 %1683 }
 0x415   : > { %3101 = vrcp.f32 %v1684_v20 }
 0x418   : > { %v1678_v21 = vpop.xlane.xlu1 %1677 }
 0x419   : > { %3103 = vrcp.f32 %v1678_v21 }
 0x41a   : > { %v1681_v23 = vpop.xlane.xlu0 %1680 }
 0x41b   : > { %3105 = vrcp.f32 %v1681_v23 }
 0x422   : > { %v3102_v25 = vpop.eup %3101 }
 0x423   : > { %v1675_v24 = vpop.xlane.xlu0 %1674  ;;  %v1720_v30 = vmul.f32 %v3102_v25, %v3476_v31 }
 0x424   : > { %3107 = vrcp.f32 %v1675_v24  ;;  %v2105_v24 = vsel %vm1749_vm2, %v1982_v5, 0 }
 0x425   : > { %v1730_v32 = vpack.c.bf16 %v1720_v30, %v1720_v30 }
 0x426   : > { %v3104_v26 = vpop.eup %3103 }
 0x427   : > { %v1669_v27 = vpop.xlane.xlu0 %1668  ;;  %v1718_v34 = vmul.f32 %v3104_v26, %v3480_v37 }
 0x428   : > { %v3106_v28 = vpop.eup %3105  ;;  %3109 = vrcp.f32 %v1669_v27 }
 0x429   : > { %v1672_v33 = vpop.xlane.xlu1 %1671  ;;  %v1719_v29 = vmul.f32 %v3106_v28, %v3484_v41 }
 0x42a   : > { %3111 = vrcp.f32 %v1672_v33 }
 0x42b   : > { %v1729_v35 = vpack.c.bf16 %v1719_v29, %v1718_v34 }
 0x42d   : > { %2939 = vmatprep.mubr.msk.bf16.mxu1 %vm1594_vm4, %v1729_v35  ;;  %v1696_v41 = vpop.xlane.xlu1 %1695 }
 0x42e   : > { %2940 = vmatmul.mubr.msk.bf16.vlgmr.msra.gmra.mxu1 %vm1594_vm4, %v1730_v32 }
 0x42f   : > { %2952 = vmatpush3.bf16.msra.mxu1 %v1922_v39 }
 0x430   : > { %2953 = vmatprep.subr.bf16.mxu1 %v1741_v36 }
 0x431   : > { %v3108_v37 = vpop.eup %3107 }
 0x432   : > { %v1717_v44 = vmul.f32 %v3108_v37, %v3489_v49  ;;  %v1739_v49 = vpack.c.bf16 %v3447_v38, %v3421_v12 }
 0x433   : > { %2954 = vmatpush3.bf16.msra.mxu1 %v1741_v36  ;;  %v1693_v31 = vpop.xlane.xlu0 %1692 }
 0x434   : > { %3113 = vrcp.f32 %v1693_v31  ;;  %v1728_v47 = vpack.c.bf16 %v1717_v44, %v1717_v44  ;;  %3024 = vmatprep.subr.msk.bf16.mxu1 %vm1749_vm2, %v1981_v1 }
 0x435   : > { %v3110_v40 = vpop.eup %3109 }
 0x436   : > { %v1715_v7 = vmul.f32 %v3110_v40, %v3494_v54 }
 0x437   : > { %v3112_v42 = vpop.eup %3111  ;;  %v1687_v43 = vpop.xlane.xlu0 %1686 }
 0x438   : > { %3115 = vrcp.f32 %v1687_v43  ;;  %v1716_v45 = vmul.f32 %v3112_v42, %v3499_v60 }
 0x439   : > { %3117 = vrcp.f32 %v1696_v41  ;;  %v1690_v57 = vpop.xlane.xlu1 %1689 }
 0x43a   : > { %3119 = vrcp.f32 %v1690_v57  ;;  %v1727_v22 = vpack.c.bf16 %v1716_v45, %v1715_v7 }
 0x43b   : > { %v1699_v46 = vpop.xlane.xlu0 %1698 }
 0x43c   : > { %3121 = vrcp.f32 %v1699_v46  ;;  %2931 = vmatprep.mubr.msk.bf16.mxu0 %vm1594_vm4, %v1727_v22 }
 0x43d   : > { %2932 = vmatmul.mubr.msk.bf16.vlgmr.msra.gmra.mxu0 %vm1594_vm4, %v1728_v47  ;;  %v1702_v50 = vpop.xlane.xlu1 %1701 }
 0x43e   : > { %2944 = vmatpush3.bf16.msra.mxu0 %v1865_v48  ;;  %3123 = vrcp.f32 %v1702_v50 }
 0x43f   : > { %2945 = vmatprep.subr.bf16.mxu0 %v1739_v49 }
 0x441   : > { %v3114_v51 = vpop.eup %3113 }
 0x442   : > { %2946 = vmatpush3.bf16.msra.mxu0 %v1739_v49  ;;  %v1723_v55 = vmul.f32 %v3114_v51, %v3509_v9 }
 0x443   : > { %3023 = vmatprep.subr.msk.bf16.mxu0 %vm1749_vm2, %v1980_v3 }
 0x444   : > { %v1732_v61 = vpack.c.bf16 %v1723_v55, %v1723_v55 }
 0x445   : > { %v3116_v52 = vpop.eup %3115 }
 0x446   : > { %v3118_v53 = vpop.eup %3117  ;;  %v1721_v56 = vmul.f32 %v3116_v52, %v3513_v6 }
 0x447   : > { %v3120_v54 = vpop.eup %3119  ;;  %v1724_v12 = vmul.f32 %v3118_v53, %v3505_v4  ;;  %v1991_v4 = vsel %vm1749_vm2, %v1980_v3, 0 }
 0x448   : > { %v1722_v19 = vmul.f32 %v3120_v54, %v3517_v13 }
 0x449   : > { %v3122_v58 = vpop.eup %3121 }
 0x44a   : > { %v1731_v59 = vpack.c.bf16 %v1722_v19, %v1721_v56  ;;  %v1725_v38 = vmul.f32 %v3122_v58, %v3521_v15  ;;  %v2162_v15 = vsel %vm1749_vm2, %v1983_v8, 0 }
 0x44b   : > { %v3124_v60 = vpop.eup %3123 }
 0x44c   : > { %2947 = vmatprep.mubr.msk.bf16.mxu0 %vm1594_vm4, %v1731_v59  ;;  %v1733_v62 = vpack.c.bf16 %v1725_v38, %v1724_v12  ;;  %v1726_v63 = vmul.f32 %v3124_v60, %v3525_v17 }
 0x44d   : > { %2948 = vmatmul.mubr.msk.bf16.vlgmr.msra.gmra.mxu0 %vm1594_vm4, %v1732_v61  ;;  %v2674_v61 = vld [vmem:[%s3686_s7] ss:$0 sm:$0xff] }
 0x44e   : > { %2955 = vmatprep.mubr.msk.bf16.mxu1 %vm1594_vm4, %v1733_v62  ;;  %v1734_v0 = vpack.c.bf16 %v1726_v63, %v1726_v63  ;;  %2960 = vmatpush3.bf16.msra.mxu0 %v1991_v4 }
 0x44f   : > { %3025 = vmatprep.subr.msk.bf16.mxu0 %vm1749_vm2, %v1982_v5 }
 0x450   : > { %2956 = vmatmul.mubr.msk.bf16.vlgmr.msra.gmra.mxu1 %vm1594_vm4, %v1734_v0 }
 0x451   : > { %2966 = vmatpush3.bf16.msra.mxu1 %v2048_v2 }
 0x452   : > { %3026 = vmatprep.subr.msk.bf16.mxu1 %vm1749_vm2, %v1983_v8 }
 0x4ee   : > { %v2941_v9 = vpop.f32.mrf.mxu1 }
 0x4ef   : > { %v1975_v14 = vpack.c.bf16 %v2941_v9, %v2941_v9 }
 0x4f0   : > { %v1844_v10 = vpop.f32.mrf.mxu1 }
 0x4f2   : > { %v2942_v6 = vpop.f32.mrf.mxu1 }
 0x4f3   : > { %v3137_v6 = vld [vmem:[%s3240_s18] sm:$0xff] }
 0x4f4   : > { %v1847_v11 = vpop.f32.mrf.mxu1 }
 0x4f5   : > { %v1974_v13 = vpack.c.bf16 %v1847_v11, %v1844_v10 }
 0x4f7   : > { %2967 = vmatprep.mubr.msk.bf16.mxu1 %vm1325_vm1, %v1974_v13 }
 0x4f8   : > { %2968 = vmatmul.mubr.msk.bf16.vlgmr.msra.gmra.mxu1 %vm1325_vm1, %v1975_v14 }
 0x4f9   : > { %2978 = vmatpush3.bf16.msra.mxu1 %v2162_v15  ;;  %v3138_v15 = vld [vmem:[%s3240_s18 + $0x10] sm:$0xff] }
 0x4fd   : > { %v2933_v16 = vpop.f32.mrf.mxu0 }
 0x4fe   : > { %v1973_v23 = vpack.c.bf16 %v2933_v16, %v2933_v16 }
 0x4ff   : > { %v1787_v17 = vpop.f32.mrf.mxu0 }
 0x501   : > { %v2934_v18 = vpop.f32.mrf.mxu0 }
 0x503   : > { %v1790_v20 = vpop.f32.mrf.mxu0 }
 0x504   : > { %v1972_v21 = vpack.c.bf16 %v1790_v20, %v1787_v17  ;;  %v3139_v17 = vld [vmem:[%s3240_s18 + $0x8] sm:$0xff] }
 0x506   : > { %2961 = vmatprep.mubr.msk.bf16.mxu0 %vm1325_vm1, %v1972_v21 }
 0x507   : > { %2962 = vmatmul.mubr.msk.bf16.vlgmr.msra.gmra.mxu0 %vm1325_vm1, %v1973_v23 }
 0x508   : > { %2972 = vmatpush3.bf16.msra.mxu0 %v2105_v24 }
 0x50d   : > { %v2949_v25 = vpop.f32.mrf.mxu0 }
 0x50e   : > { %v1977_v35 = vpack.c.bf16 %v2949_v25, %v2949_v25 }
 0x50f   : > { %v1901_v26 = vpop.f32.mrf.mxu0 }
 0x510   : > { %v2957_v27 = vpop.f32.mrf.mxu1 }
 0x511   : > { %v2950_v28 = vpop.f32.mrf.mxu0  ;;  %v1979_v36 = vpack.c.bf16 %v2957_v27, %v2957_v27 }
 0x512   : > { %v1958_v30 = vpop.f32.mrf.mxu1 }
 0x513   : > { %v1904_v33 = vpop.f32.mrf.mxu0 }
 0x514   : > { %v1976_v34 = vpack.c.bf16 %v1904_v33, %v1901_v26  ;;  %v2958_v29 = vpop.f32.mrf.mxu1 }
 0x516   : > { %v1961_v32 = vpop.f32.mrf.mxu1  ;;  %2973 = vmatprep.mubr.msk.bf16.mxu0 %vm1325_vm1, %v1976_v34 }
 0x517   : > { %v1978_v39 = vpack.c.bf16 %v1961_v32, %v1958_v30  ;;  %2974 = vmatmul.mubr.msk.bf16.vlgmr.msra.gmra.mxu0 %vm1325_vm1, %v1977_v35 }
 0x519   : > { %2979 = vmatprep.mubr.msk.bf16.mxu1 %vm1325_vm1, %v1978_v39 }
 0x51a   : > { %2980 = vmatmul.mubr.msk.bf16.vlgmr.msra.gmra.mxu1 %vm1325_vm1, %v1979_v36 }
 0x5b8   : > { %v2969_v31 = vpop.f32.mrf.mxu1 }
 0x5b9   : > { %v2227_v45 = vsel %vm474_vm0, %v2969_v31, 0.0 }
 0x5ba   : > { %v2084_v37 = vpop.f32.mrf.mxu1 }
 0x5bb   : > { %v2213_v47 = vsel %vm474_vm0, %v2084_v37, 0.0  ;;  %v3061_v37 = vld [vmem:[%s3689_s10 + $0x8] sm:$0xff]  }
 0x5bc   : > { %v2970_v40 = vpop.f32.mrf.mxu1  ;;  %2983 = vmatprep.subr.bf16.mxu0 %v3061_v37 }
 0x5bd   : > { %v3062_v40 = vld [vmem:[%s3689_s10] sm:$0xff]   ;;  %2984 = vmatpush3.bf16.msra.mxu0 %v3061_v37 }
 0x5be   : > { %v2087_v48 = vpop.f32.mrf.mxu1  ;;  %2985 = vmatprep.subr.bf16.mxu0 %v3062_v40 }
 0x5bf   : > { %v2220_v59 = vsel %vm474_vm0, %v2087_v48, 0.0 }
 0x5c1   : > { %2986 = vmatpush3.bf16.msra.mxu0 %v3062_v40 }
 0x5c7   : > { %v2963_v41 = vpop.f32.mrf.mxu0 }
 0x5c8   : > { %v2226_v44 = vsel %vm474_vm0, %v2963_v41, 0.0 }
 0x5c9   : > { %v2027_v42 = vpop.f32.mrf.mxu0  ;;  %v2228_v22 = vadd.f32 %v2227_v45, %v2226_v44 }
 0x5ca   : > { %v2212_v57 = vsel %vm474_vm0, %v2027_v42, 0.0 }
 0x5cb   : > { %v2964_v43 = vpop.f32.mrf.mxu0  ;;  %v2214_v50 = vadd.f32 %v2213_v47, %v2212_v57 }
 0x5cd   : > { %v2030_v7 = vpop.f32.mrf.mxu0 }
 0x5ce   : > { %v2219_v53 = vsel %vm474_vm0, %v2030_v7, 0.0 }
 0x5cf   : > { %v2221_v60 = vadd.f32 %v2220_v59, %v2219_v53 }
 0x5d7   : > { %v2975_v46 = vpop.f32.mrf.mxu0 }
 0x5d8   : > { %v2229_v49 = vsel %vm474_vm0, %v2975_v46, 0.0 }
 0x5d9   : > { %v2230_v51 = vadd.f32 %v2229_v49, %v2228_v22  ;;  %v2141_v52 = vpop.f32.mrf.mxu0  ;;  %v2675_v49 = vld [vmem:[%s3687_s8] ss:$0 sm:$0xff] }
 0x5da   : > { %v2215_v54 = vsel %vm474_vm0, %v2141_v52, 0.0  ;;  %v2981_v55 = vpop.f32.mrf.mxu1 }
 0x5db   : > { %v2216_v56 = vadd.f32 %v2215_v54, %v2214_v50  ;;  %v2231_v19 = vsel %vm474_vm0, %v2981_v55, 0.0  ;;  %v2976_v58 = vpop.f32.mrf.mxu0  ;;  %v2676_v55 = vld [vmem:[%s3688_s9] ss:$0 sm:$0xff] }
 0x5dc   : > { %v2232_v12 = vadd.f32 %v2231_v19, %v2230_v51  ;;  %v2198_v38 = vpop.f32.mrf.mxu1 }
 0x5dd   : > { %v2217_v62 = vsel %vm474_vm0, %v2198_v38, 0.0  ;;  %v2144_v63 = vpop.f32.mrf.mxu0 }
 0x5de   : > { %v2218_v0 = vadd.f32 %v2217_v62, %v2216_v56  ;;  %v2222_v1 = vsel %vm474_vm0, %v2144_v63, 0.0  ;;  %v2982_v2 = vpop.f32.mrf.mxu1  ;;  %v2242_v4 = vadd.f32 %v2674_v61, %v2232_v12  ;;  %v3064_v62 = vld [vmem:[%s3691_s12 + $0x30] sm:$0xff]   ;;  %v3065_v63 = vld [vmem:[%s3691_s12 + $0x28] sm:$0xff]  }
 0x5df   : > { %v2223_v3 = vadd.f32 %v2222_v1, %v2221_v60  ;;  %v3067_v1 = vld [vmem:[%s3691_s12 + $0x18] sm:$0xff]   ;;  %v3068_v2 = vld [vmem:[%s3691_s12 + $0x10] sm:$0xff]  }
 0x5e0   : > { %v2240_v5 = vadd.f32 %v2674_v61, %v2218_v0  ;;  %v2201_v8 = vpop.f32.mrf.mxu1  ;;  %v3606_v16 = vadd.f32 %v3138_v15, %v2242_v4  ;;  %v3066_v0 = vld [vmem:[%s3691_s12 + $0x20] sm:$0xff]  }
 0x5e1   : > { %v2224_v9 = vsel %vm474_vm0, %v2201_v8, 0.0  ;;  %v3070_v4 = vld [vmem:[%s3691_s12] sm:$0xff]  }
 0x5e2   : > { %v2225_v10 = vadd.f32 %v2224_v9, %v2223_v3  ;;  %v3601_v11 = vadd.f32 %v3137_v6, %v2240_v5  ;;  %v2254_v20 = vsel %vm474_vm0, %v3606_v16, 0.0  ;;  %v3069_v3 = vld [vmem:[%s3691_s12 + $0x8] sm:$0xff]   ;;  %v2677_v5 = vld [vmem:[%s3690_s11] ss:$0 sm:$0xff] }
 0x5e4   : > { %v2241_v13 = vadd.f32 %v2674_v61, %v2225_v10  ;;  %v2248_v14 = vsel %vm474_vm0, %v3601_v11, 0.0  ;;  %v3063_v61 = vld [vmem:[%s3691_s12 + $0x38] sm:$0xff]  }
 0x5e5   : > { %2249 = vadd.xlane.f32.xlu0 %v2248_v14  ;;  %2991 = vmatprep.subr.bf16.mxu1 %v3063_v61 }
 0x5e6   : > { %v3609_v18 = vadd.f32 %v3139_v17, %v2241_v13  ;;  %2992 = vmatpush3.bf16.msra.mxu1 %v3063_v61 }
 0x5e7   : > { %2993 = vmatprep.subr.bf16.mxu1 %v3064_v62 }
 0x5e8   : > { %v2251_v21 = vsel %vm474_vm0, %v3609_v18, 0.0 }
 0x5e9   : > { %2255 = vadd.xlane.f32.xlu0 %v2254_v20  ;;  %2252 = vadd.xlane.f32.xlu1 %v2251_v21 }
 0x5ea   : > { %2994 = vmatpush3.bf16.msra.mxu1 %v3064_v62 }
 0x5eb   : > { %2995 = vmatprep.subr.bf16.mxu1 %v3065_v63 }
 0x5ee   : > { %2996 = vmatpush3.bf16.msra.mxu1 %v3065_v63 }
 0x5ef   : > { %2997 = vmatprep.subr.bf16.mxu1 %v3066_v0 }
 0x5f2   : > { %2998 = vmatpush3.bf16.msra.mxu1 %v3066_v0 }
 0x5f3   : > { %2999 = vmatprep.subr.bf16.mxu1 %v3067_v1 }
 0x5f6   : > { %3000 = vmatpush3.bf16.msra.mxu1 %v3067_v1 }
 0x5f7   : > { %3001 = vmatprep.subr.bf16.mxu1 %v3068_v2 }
 0x5fa   : > { %3002 = vmatpush3.bf16.msra.mxu1 %v3068_v2 }
 0x5fb   : > { %3003 = vmatprep.subr.bf16.mxu1 %v3069_v3 }
 0x5fe   : > { %3004 = vmatpush3.bf16.msra.mxu1 %v3069_v3 }
 0x5ff   : > { %3005 = vmatprep.subr.bf16.mxu1 %v3070_v4 }
 0x602   : > { %3006 = vmatpush3.bf16.msra.mxu1 %v3070_v4 }
 0x66e   : > { %v2250_v23 = vpop.xlane.xlu0 %2249 }
 0x66f   : > { %v2257_v24 = vmul.f32 0.03125, %v2250_v23 }
 0x671   : > { %v2260_v25 = vsub.f32 %v3601_v11, %v2257_v24 }
 0x672   : > { %v2256_v26 = vpop.xlane.xlu0 %2255  ;;  %v2253_v27 = vpop.xlane.xlu1 %2252 }
 0x673   : > { %v2259_v28 = vmul.f32 0.03125, %v2256_v26  ;;  %v2258_v30 = vmul.f32 0.03125, %v2253_v27  ;;  %v2263_v33 = vmul.f32 %v2260_v25, %v2260_v25 }
 0x675   : > { %v2262_v34 = vsub.f32 %v3606_v16, %v2259_v28  ;;  %v2261_v29 = vsub.f32 %v3609_v18, %v2258_v30  ;;  %v2266_v35 = vsel %vm474_vm0, %v2263_v33, 0.0 }
 0x676   : > { %2267 = vadd.xlane.f32.xlu1 %v2266_v35 }
 0x677   : > { %v2265_v32 = vmul.f32 %v2262_v34, %v2262_v34  ;;  %v2264_v39 = vmul.f32 %v2261_v29, %v2261_v29 }
 0x679   : > { %v2272_v36 = vsel %vm474_vm0, %v2265_v32, 0.0  ;;  %v2269_v31 = vsel %vm474_vm0, %v2264_v39, 0.0 }
 0x67a   : > { %2273 = vadd.xlane.f32.xlu1 %v2272_v36  ;;  %2270 = vadd.xlane.f32.xlu0 %v2269_v31 }
 0x6ff   : > { %v2268_v41 = vpop.xlane.xlu1 %2267 }
 0x700   : > { %v2275_v42 = vmul.f32 0.03125, %v2268_v41 }
 0x702   : > { %v2278_v43 = vadd.f32 1e-05, %v2275_v42 }
 0x703   : > { %v2271_v44 = vpop.xlane.xlu0 %2270  ;;  %v2274_v7 = vpop.xlane.xlu1 %2273 }
 0x704   : > { %3125 = vrsqrt.f32 %v2278_v43  ;;  %v2276_v45 = vmul.f32 0.03125, %v2271_v44  ;;  %v2277_v57 = vmul.f32 0.03125, %v2274_v7 }
 0x706   : > { %v2279_v22 = vadd.f32 1e-05, %v2276_v45  ;;  %v2280_v46 = vadd.f32 1e-05, %v2277_v57 }
 0x708   : > { %3127 = vrsqrt.f32 %v2279_v22 }
 0x709   : > { %3129 = vrsqrt.f32 %v2280_v46 }
 0x711   : > { %v3126_v47 = vpop.eup %3125 }
 0x712   : > { %v2284_v48 = vmul.f32 %v3126_v47, %v2260_v25  ;;  %v2682_v47 = vld [vmem:[%s3692_s13] ss:$0 sm:$0xff] }
 0x714   : > { %v2293_v53 = vmul.f32 %v2675_v49, %v2284_v48 }
 0x715   : > { %v3128_v50 = vpop.eup %3127 }
 0x716   : > { %v3130_v51 = vpop.eup %3129  ;;  %v2285_v52 = vmul.f32 %v3128_v50, %v2261_v29  ;;  %v2302_v58 = vadd.f32 %v2676_v55, %v2293_v53 }
 0x717   : > { %v2286_v54 = vmul.f32 %v3130_v51, %v2262_v34 }
 0x718   : > { %v2294_v56 = vmul.f32 %v2675_v49, %v2285_v52 }
 0x719   : > { %v2295_v19 = vmul.f32 %v2675_v49, %v2286_v54 }
 0x71a   : > { %v2303_v59 = vadd.f32 %v2676_v55, %v2294_v56 }
 0x71b   : > { %v2304_v12 = vadd.f32 %v2676_v55, %v2295_v19 }
 0x71c   : > { %v2305_v38 = vpack.c.bf16 %v2303_v59, %v2302_v58 }
 0x71d   : > { %v2306_v60 = vpack.c.bf16 %v2304_v12, %v2304_v12 }
 0x71e   : > { %2987 = vmatprep.mubr.msk.bf16.mxu0 %vm474_vm0, %v2305_v38 }
 0x71f   : > { %2988 = vmatmul.mubr.msk.bf16.vlgmr.msra.gmra.mxu0 %vm474_vm0, %v2306_v60 }
 0x7df   : > { %v2989_v8 = vpop.f32.mrf.mxu0 }
 0x7e0   : > { %v2379_v9 = vadd.f32 %v2989_v8, %v2677_v5 }
 0x7e1   : > { %v2370_v10 = vpop.f32.mrf.mxu0 }
 0x7e2   : > { %v2389_v6 = vmul.f32 0.044715, %v2379_v9  ;;  %v2371_v13 = vadd.f32 %v2677_v5, %v2370_v10  ;;  %v2386_v41 = vmul.f32 0.5, %v2379_v9 }
 0x7e3   : > { %v2990_v14 = vpop.f32.mrf.mxu0 }
 0x7e4   : > { %v2392_v15 = vmul.f32 %v2389_v6, %v2379_v9  ;;  %v2387_v17 = vmul.f32 0.044715, %v2371_v13  ;;  %v2384_v42 = vmul.f32 0.5, %v2371_v13 }
 0x7e5   : > { %v2373_v20 = vpop.f32.mrf.mxu0 }
 0x7e6   : > { %v2395_v21 = vmul.f32 %v2392_v15, %v2379_v9  ;;  %v2390_v23 = vmul.f32 %v2387_v17, %v2371_v13  ;;  %v2374_v24 = vadd.f32 %v2677_v5, %v2373_v20 }
 0x7e8   : > { %v2398_v25 = vadd.f32 %v2395_v21, %v2379_v9  ;;  %v2393_v26 = vmul.f32 %v2390_v23, %v2371_v13  ;;  %v2388_v27 = vmul.f32 0.044715, %v2374_v24  ;;  %v2385_v43 = vmul.f32 0.5, %v2374_v24 }
 0x7ea   : > { %v2401_v28 = vmul.f32 0.7978846, %v2398_v25  ;;  %v2391_v30 = vmul.f32 %v2388_v27, %v2374_v24  ;;  %v2396_v33 = vadd.f32 %v2393_v26, %v2371_v13 }
 0x7ec   : > { %v2394_v34 = vmul.f32 %v2391_v30, %v2374_v24  ;;  %v2399_v29 = vmul.f32 0.7978846, %v2396_v33  ;;  %3131 = vtanh.f32 %v2401_v28 }
 0x7ee   : > { %v2397_v35 = vadd.f32 %v2394_v34, %v2374_v24  ;;  %3133 = vtanh.f32 %v2399_v29 }
 0x7f0   : > { %v2400_v32 = vmul.f32 0.7978846, %v2397_v35 }
 0x7f2   : > { %3135 = vtanh.f32 %v2400_v32 }
 0x7f9   : > { %v3132_v39 = vpop.eup %3131 }
 0x7fa   : > { %v2407_v31 = vadd.f32 1.0, %v3132_v39 }
 0x7fb   : > { %v3134_v36 = vpop.eup %3133 }
 0x7fc   : > { %v2405_v37 = vadd.f32 1.0, %v3134_v36  ;;  %v2410_v7 = vmul.f32 %v2407_v31, %v2386_v41 }
 0x7fe   : > { %v2408_v45 = vmul.f32 %v2405_v37, %v2384_v42  ;;  %v2412_v46 = vpack.c.bf16 %v2410_v7, %v2410_v7 }
 0x7ff   : > { %v3136_v40 = vpop.eup %3135 }
 0x800   : > { %v2406_v44 = vadd.f32 1.0, %v3136_v40 }
 0x802   : > { %v2409_v57 = vmul.f32 %v2406_v44, %v2385_v43 }
 0x804   : > { %v2411_v22 = vpack.c.bf16 %v2409_v57, %v2408_v45 }
 0x806   : > { %3007 = vmatprep.mubr.bf16.mxu1 %v2411_v22 }
 0x807   : > { %3008 = vmatmul.mubr.bf16.vlgmr.msra.gmra.mxu1 %v2412_v46 }
 0x8c7   : > { %v3009_v48 = vpop.f32.mrf.mxu1 }
 0x8c8   : > { %v2527_v49 = vadd.f32 %v3009_v48, %v2682_v47 }
 0x8c9   : > { %v2518_v50 = vpop.f32.mrf.mxu1 }
 0x8ca   : > { %v2534_v51 = vadd.f32 %v2527_v49, %v3606_v16  ;;  %v2519_v52 = vadd.f32 %v2682_v47, %v2518_v50 }
 0x8cb   : > { %v3010_v53 = vpop.f32.mrf.mxu1 }
 0x8cc   : > { %2537 = vst.msk [vmem:[%s467_s24 + $0x10] sm:$0xff] %vm474_vm0, %v2534_v51  ;;  %v2532_v54 = vadd.f32 %v2519_v52, %v3601_v11 }
 0x8cd   : > { %v2521_v55 = vpop.f32.mrf.mxu1 }
 0x8ce   : > { %2535 = vst.msk [vmem:[%s467_s24] sm:$0xff] %vm474_vm0, %v2532_v54  ;;  %v2522_v56 = vadd.f32 %v2682_v47, %v2521_v55 }
 0x8d0   : > { %v2533_v19 = vadd.f32 %v2522_v56, %v3609_v18 }
 0x8d2   : > { %2536 = vst.msk [vmem:[%s467_s24 + $0x8] sm:$0xff] %vm474_vm0, %v2533_v19 }
 0x8d3 PF: > { %s24_s29 = sadd.s32 1, %s3146_s29  }
 0x8d4   : > { %p21_p4 = scmp.ge.s32.totalorder %s24_s29, 4  }
 0x8d6   :  { %23 = sbr.rel (!%p21_p4) target bundleno = 1 (0x1), region = 106 }

</bundles_post_ra>
